<compile_context>
chip_gen: v7x
topology: tpu7x:2x2x1
jax: 0.10.0
libtpu: 0.0.40
codegen_flags: <defaults>
</compile_context>

<pallas_src>
import functools

import jax
import jax.numpy as jnp
from jax.experimental import pallas as pl
from jax.experimental.pallas import tpu as pltpu


def _round_up(x: int, m: int) -> int:
    return ((x + m - 1) // m) * m


def _embed_gather_kernel(ids_ref, w_hbm, out_ref, rows, sem, *,
                         group, vocab, inner_steps):
    """One grid step gathers `group` embedding rows (and prefetches the next).

    ids_ref : (N_pad,) int32 in SMEM (scalar prefetch) -- flattened token ids
    w_hbm   : (V, D) embedding table, left in HBM (memory_space=pl.ANY)
    out_ref : (group, D) output tile in VMEM
    rows    : (2, group, D) VMEM scratch (double-buffered DMA landing buffer)
    sem     : (2,) DMA semaphores, one per landing-buffer slot
    """
    o = pl.program_id(0)          # parallel chunk (megacore on v7x)
    i = pl.program_id(1)          # sequential step within the chunk
    step = o * inner_steps + i    # flat step -> which G-token block
    slot = i & 1

    def issue(step_idx, slot_idx):
        base = step_idx * group
        # Issue all row DMAs up front (all in flight -> latency overlapped).
        for t in range(group):
            idx = ids_ref[base + t]
            # Clamp like jnp.take (PyTorch nn.Embedding would raise instead).
            idx = jnp.minimum(jnp.maximum(idx, 0), vocab - 1)
            pltpu.make_async_copy(
                w_hbm.at[pl.ds(idx, 1), :],          # (1, D) row in HBM
                rows.at[slot_idx, pl.ds(t, 1), :],   # (1, D) slot in VMEM
                sem.at[slot_idx],
            ).start()

    # Prologue: first step of each chunk gathers its own rows (slot 0).
    @pl.when(i == 0)
    def _prologue():
        issue(step, slot)

    # Prefetch next step's rows into the other slot BEFORE waiting on this
    # step's rows, so the DMA engine stays busy across the step epilogue.
    if inner_steps > 1:
        @pl.when(i + 1 < inner_steps)
        def _prefetch():
            issue(step + 1, (i + 1) & 1)

    # Wait for this step's rows (issued either by the prologue or by the
    # previous step's prefetch).  Reconstructed descriptors carry the same
    # (1, D) transfer size and the same per-slot semaphore.
    for t in range(group):
        pltpu.make_async_copy(
            w_hbm.at[pl.ds(0, 1), :],
            rows.at[slot, pl.ds(t, 1), :],
            sem.at[slot],
        ).wait()

    # Lane-dense (group, D) store; astype is a no-op when dtypes match.
    out_ref[...] = rows[slot].astype(out_ref.dtype)


def embedding_forward(captions, weights, *, group_size=128, out_dtype=None):
    """captions: (B, S) int ids, weights: (V, D) table -> (B, S, D).

    group_size: tokens gathered per grid step (rounded to a multiple of 8).
    out_dtype : output dtype (defaults to the table dtype; pass jnp.bfloat16
                to halve writeback bytes on this mem-bound gather).
    """
    B, S = captions.shape
    V, D = weights.shape
    out_dtype = weights.dtype if out_dtype is None else out_dtype

    # Flatten tokens; the kernel works on an (N, D) slab and we reshape after.
    N = B * S
    ids = captions.reshape(N).astype(jnp.int32)

    # Pick G: multiple of 8 (sublane alignment of the (G, D) output block),
    # no larger than the padded token count, and sized so the double-buffered
    # landing scratch + pipelined output blocks stay well inside VMEM.
    itemsize = jnp.dtype(weights.dtype).itemsize
    G = max(8, min(int(group_size), _round_up(N, 8)))
    G = _round_up(G, 8)
    while G > 8 and 4 * G * D * itemsize > (8 << 20):
        G = max(8, G // 2)

    steps = -(-N // G)
    outer = 2 if steps >= 2 else 1          # 2 parallel chunks -> megacore on v7x
    inner = -(-steps // outer)
    steps = outer * inner
    n_pad = steps * G
    if n_pad != N:
        # Pad with id 0 (valid row after clamp); padded rows are sliced away.
        ids = jnp.pad(ids, (0, n_pad - N))

    kernel = functools.partial(_embed_gather_kernel,
                               group=G, vocab=V, inner_steps=inner)

    out_flat = pl.pallas_call(
        kernel,
        out_shape=jax.ShapeDtypeStruct((n_pad, D), out_dtype),
        grid_spec=pltpu.PrefetchScalarGridSpec(
            num_scalar_prefetch=1,                      # ids -> SMEM
            grid=(outer, inner),
            in_specs=[
                pl.BlockSpec(memory_space=pl.ANY),      # table stays in HBM
            ],
            out_specs=pl.BlockSpec(
                (G, D), lambda o, i, ids_smem: (o * inner + i, 0)),
            scratch_shapes=[
                pltpu.VMEM((2, G, D), weights.dtype),   # double-buffered rows
                pltpu.SemaphoreType.DMA((2,)),          # one sem per slot
            ],
        ),
        compiler_params=pltpu.CompilerParams(
            dimension_semantics=("parallel", "arbitrary"),
        ),
    )(ids, weights)

    return out_flat[:N].reshape(B, S, D)


if __name__ == "__main__":
    # Small shapes consistent with the module's forward: captions (B, S).
    B, S = 2, 8
    V, D = 32, 128   # vocab_size, embed_dim

    key = jax.random.PRNGKey(0)
    k_w, k_c = jax.random.split(key)

    # TODO(synk): Word2VecTransformer pretrained vectors are external data with
    # no Pallas/JAX equivalent; the table is initialized deterministically.
    weights = jax.random.normal(k_w, (V, D), dtype=jnp.float32)
    captions = jax.random.randint(k_c, (B, S), minval=0, maxval=V, dtype=jnp.int32)

    out = embedding_forward(captions, weights)
    out = jax.block_until_ready(out)

    # sanity check against plain-JAX gather (exact copy -> bit-exact)
    ref = jnp.take(weights, captions, axis=0)
    assert out.shape == (B, S, D)
    assert jnp.array_equal(out, ref), "mismatch vs reference gather"

    print("KERNEL_OK")
</pallas_src>

<mosaic_0001>
module attributes {stable_mosaic.version = 11 : i64} {
  func.func @_embed_gather_kernel(%arg0: i32, %arg1: i32, %arg2: memref<16xi32, #tpu.memory_space<smem>>, %arg3: memref<32x128xf32, #tpu.memory_space<any>>, %arg4: memref<16x128xf32, #tpu.memory_space<vmem>>, %arg5: memref<2x16x128xf32, #tpu.memory_space<vmem>>, %arg6: memref<2x!tpu.dma_semaphore, #tpu.memory_space<semaphore_mem>>) attributes {dimension_semantics = [#tpu.dimension_semantics<parallel>, #tpu.dimension_semantics<arbitrary>], iteration_bounds = array<i64: 1, 1>, scalar_prefetch = 1 : i64, scratch_operands = 2 : i64, tpu.core_type = #tpu.core_type<tc>, window_params = [{}, {transform_indices = @transform_1, window_bounds = array<i64: 16, 128>}]} {
    %c1_i32 = arith.constant 1 : i32
    %0 = arith.muli %arg0, %c1_i32 : i32
    %1 = arith.addi %0, %arg1 : i32
    %c1_i32_0 = arith.constant 1 : i32
    %2 = arith.andi %arg1, %c1_i32_0 : i32
    %c0_i32 = arith.constant 0 : i32
    %3 = arith.cmpi eq, %arg1, %c0_i32 : i32
    %4 = arith.extui %3 : i1 to i32
    %c0_i32_1 = arith.constant 0 : i32
    %5 = arith.cmpi ne, %4, %c0_i32_1 : i32
    scf.if %5 {
      %c16_i32 = arith.constant 16 : i32
      %90 = arith.muli %1, %c16_i32 : i32
      %c0_i32_55 = arith.constant 0 : i32
      %91 = arith.addi %90, %c0_i32_55 : i32
      %92 = arith.index_cast %91 : i32 to index
      %93 = memref.load %arg2[%92] : memref<16xi32, #tpu.memory_space<smem>>
      %c0_i32_56 = arith.constant 0 : i32
      %94 = arith.maxsi %93, %c0_i32_56 : i32
      %c31_i32 = arith.constant 31 : i32
      %95 = arith.minsi %94, %c31_i32 : i32
      %c0_i32_57 = arith.constant 0 : i32
      %96 = tpu.memref_slice %arg3[%95, %c0_i32_57] : memref<32x128xf32, #tpu.memory_space<any>> -> memref<1x128xf32, #tpu.memory_space<any>>
      %c0_i32_58 = arith.constant 0 : i32
      %c0_i32_59 = arith.constant 0 : i32
      %97 = tpu.memref_slice %arg5[%2, %c0_i32_58, %c0_i32_59] : memref<2x16x128xf32, #tpu.memory_space<vmem>> -> memref<1x1x128xf32, #tpu.memory_space<vmem>>
      %98 = tpu.memref_squeeze %97 : memref<1x1x128xf32, #tpu.memory_space<vmem>> -> memref<1x128xf32, #tpu.memory_space<vmem>>
      %99 = tpu.memref_slice %arg6[%2] : memref<2x!tpu.dma_semaphore, #tpu.memory_space<semaphore_mem>> -> memref<1x!tpu.dma_semaphore, #tpu.memory_space<semaphore_mem>>
      %100 = tpu.memref_squeeze %99 : memref<1x!tpu.dma_semaphore, #tpu.memory_space<semaphore_mem>> -> memref<!tpu.dma_semaphore, #tpu.memory_space<semaphore_mem>>
      tpu.enqueue_dma source(%96 : memref<1x128xf32, #tpu.memory_space<any>>) target(%98 : memref<1x128xf32, #tpu.memory_space<vmem>>) target_semaphore(%100 : memref<!tpu.dma_semaphore, #tpu.memory_space<semaphore_mem>>)
      %c1_i32_60 = arith.constant 1 : i32
      %101 = arith.addi %90, %c1_i32_60 : i32
      %102 = arith.index_cast %101 : i32 to index
      %103 = memref.load %arg2[%102] : memref<16xi32, #tpu.memory_space<smem>>
      %c0_i32_61 = arith.constant 0 : i32
      %104 = arith.maxsi %103, %c0_i32_61 : i32
      %c31_i32_62 = arith.constant 31 : i32
      %105 = arith.minsi %104, %c31_i32_62 : i32
      %c0_i32_63 = arith.constant 0 : i32
      %106 = tpu.memref_slice %arg3[%105, %c0_i32_63] : memref<32x128xf32, #tpu.memory_space<any>> -> memref<1x128xf32, #tpu.memory_space<any>>
      %c1_i32_64 = arith.constant 1 : i32
      %c0_i32_65 = arith.constant 0 : i32
      %107 = tpu.memref_slice %arg5[%2, %c1_i32_64, %c0_i32_65] : memref<2x16x128xf32, #tpu.memory_space<vmem>> -> memref<1x1x128xf32, #tpu.memory_space<vmem>>
      %108 = tpu.memref_squeeze %107 : memref<1x1x128xf32, #tpu.memory_space<vmem>> -> memref<1x128xf32, #tpu.memory_space<vmem>>
      %109 = tpu.memref_slice %arg6[%2] : memref<2x!tpu.dma_semaphore, #tpu.memory_space<semaphore_mem>> -> memref<1x!tpu.dma_semaphore, #tpu.memory_space<semaphore_mem>>
      %110 = tpu.memref_squeeze %109 : memref<1x!tpu.dma_semaphore, #tpu.memory_space<semaphore_mem>> -> memref<!tpu.dma_semaphore, #tpu.memory_space<semaphore_mem>>
      tpu.enqueue_dma source(%106 : memref<1x128xf32, #tpu.memory_space<any>>) target(%108 : memref<1x128xf32, #tpu.memory_space<vmem>>) target_semaphore(%110 : memref<!tpu.dma_semaphore, #tpu.memory_space<semaphore_mem>>)
      %c2_i32_66 = arith.constant 2 : i32
      %111 = arith.addi %90, %c2_i32_66 : i32
      %112 = arith.index_cast %111 : i32 to index
      %113 = memref.load %arg2[%112] : memref<16xi32, #tpu.memory_space<smem>>
      %c0_i32_67 = arith.constant 0 : i32
      %114 = arith.maxsi %113, %c0_i32_67 : i32
      %c31_i32_68 = arith.constant 31 : i32
      %115 = arith.minsi %114, %c31_i32_68 : i32
      %c0_i32_69 = arith.constant 0 : i32
      %116 = tpu.memref_slice %arg3[%115, %c0_i32_69] : memref<32x128xf32, #tpu.memory_space<any>> -> memref<1x128xf32, #tpu.memory_space<any>>
      %c2_i32_70 = arith.constant 2 : i32
      %c0_i32_71 = arith.constant 0 : i32
      %117 = tpu.memref_slice %arg5[%2, %c2_i32_70, %c0_i32_71] : memref<2x16x128xf32, #tpu.memory_space<vmem>> -> memref<1x1x128xf32, #tpu.memory_space<vmem>>
      %118 = tpu.memref_squeeze %117 : memref<1x1x128xf32, #tpu.memory_space<vmem>> -> memref<1x128xf32, #tpu.memory_space<vmem>>
      %119 = tpu.memref_slice %arg6[%2] : memref<2x!tpu.dma_semaphore, #tpu.memory_space<semaphore_mem>> -> memref<1x!tpu.dma_semaphore, #tpu.memory_space<semaphore_mem>>
      %120 = tpu.memref_squeeze %119 : memref<1x!tpu.dma_semaphore, #tpu.memory_space<semaphore_mem>> -> memref<!tpu.dma_semaphore, #tpu.memory_space<semaphore_mem>>
      tpu.enqueue_dma source(%116 : memref<1x128xf32, #tpu.memory_space<any>>) target(%118 : memref<1x128xf32, #tpu.memory_space<vmem>>) target_semaphore(%120 : memref<!tpu.dma_semaphore, #tpu.memory_space<semaphore_mem>>)
      %c3_i32_72 = arith.constant 3 : i32
      %121 = arith.addi %90, %c3_i32_72 : i32
      %122 = arith.index_cast %121 : i32 to index
      %123 = memref.load %arg2[%122] : memref<16xi32, #tpu.memory_space<smem>>
      %c0_i32_73 = arith.constant 0 : i32
      %124 = arith.maxsi %123, %c0_i32_73 : i32
      %c31_i32_74 = arith.constant 31 : i32
      %125 = arith.minsi %124, %c31_i32_74 : i32
      %c0_i32_75 = arith.constant 0 : i32
      %126 = tpu.memref_slice %arg3[%125, %c0_i32_75] : memref<32x128xf32, #tpu.memory_space<any>> -> memref<1x128xf32, #tpu.memory_space<any>>
      %c3_i32_76 = arith.constant 3 : i32
      %c0_i32_77 = arith.constant 0 : i32
      %127 = tpu.memref_slice %arg5[%2, %c3_i32_76, %c0_i32_77] : memref<2x16x128xf32, #tpu.memory_space<vmem>> -> memref<1x1x128xf32, #tpu.memory_space<vmem>>
      %128 = tpu.memref_squeeze %127 : memref<1x1x128xf32, #tpu.memory_space<vmem>> -> memref<1x128xf32, #tpu.memory_space<vmem>>
      %129 = tpu.memref_slice %arg6[%2] : memref<2x!tpu.dma_semaphore, #tpu.memory_space<semaphore_mem>> -> memref<1x!tpu.dma_semaphore, #tpu.memory_space<semaphore_mem>>
      %130 = tpu.memref_squeeze %129 : memref<1x!tpu.dma_semaphore, #tpu.memory_space<semaphore_mem>> -> memref<!tpu.dma_semaphore, #tpu.memory_space<semaphore_mem>>
      tpu.enqueue_dma source(%126 : memref<1x128xf32, #tpu.memory_space<any>>) target(%128 : memref<1x128xf32, #tpu.memory_space<vmem>>) target_semaphore(%130 : memref<!tpu.dma_semaphore, #tpu.memory_space<semaphore_mem>>)
      %c4_i32_78 = arith.constant 4 : i32
      %131 = arith.addi %90, %c4_i32_78 : i32
      %132 = arith.index_cast %131 : i32 to index
      %133 = memref.load %arg2[%132] : memref<16xi32, #tpu.memory_space<smem>>
      %c0_i32_79 = arith.constant 0 : i32
      %134 = arith.maxsi %133, %c0_i32_79 : i32
      %c31_i32_80 = arith.constant 31 : i32
      %135 = arith.minsi %134, %c31_i32_80 : i32
      %c0_i32_81 = arith.constant 0 : i32
      %136 = tpu.memref_slice %arg3[%135, %c0_i32_81] : memref<32x128xf32, #tpu.memory_space<any>> -> memref<1x128xf32, #tpu.memory_space<any>>
      %c4_i32_82 = arith.constant 4 : i32
      %c0_i32_83 = arith.constant 0 : i32
      %137 = tpu.memref_slice %arg5[%2, %c4_i32_82, %c0_i32_83] : memref<2x16x128xf32, #tpu.memory_space<vmem>> -> memref<1x1x128xf32, #tpu.memory_space<vmem>>
      %138 = tpu.memref_squeeze %137 : memref<1x1x128xf32, #tpu.memory_space<vmem>> -> memref<1x128xf32, #tpu.memory_space<vmem>>
      %139 = tpu.memref_slice %arg6[%2] : memref<2x!tpu.dma_semaphore, #tpu.memory_space<semaphore_mem>> -> memref<1x!tpu.dma_semaphore, #tpu.memory_space<semaphore_mem>>
      %140 = tpu.memref_squeeze %139 : memref<1x!tpu.dma_semaphore, #tpu.memory_space<semaphore_mem>> -> memref<!tpu.dma_semaphore, #tpu.memory_space<semaphore_mem>>
      tpu.enqueue_dma source(%136 : memref<1x128xf32, #tpu.memory_space<any>>) target(%138 : memref<1x128xf32, #tpu.memory_space<vmem>>) target_semaphore(%140 : memref<!tpu.dma_semaphore, #tpu.memory_space<semaphore_mem>>)
      %c5_i32_84 = arith.constant 5 : i32
      %141 = arith.addi %90, %c5_i32_84 : i32
      %142 = arith.index_cast %141 : i32 to index
      %143 = memref.load %arg2[%142] : memref<16xi32, #tpu.memory_space<smem>>
      %c0_i32_85 = arith.constant 0 : i32
      %144 = arith.maxsi %143, %c0_i32_85 : i32
      %c31_i32_86 = arith.constant 31 : i32
      %145 = arith.minsi %144, %c31_i32_86 : i32
      %c0_i32_87 = arith.constant 0 : i32
      %146 = tpu.memref_slice %arg3[%145, %c0_i32_87] : memref<32x128xf32, #tpu.memory_space<any>> -> memref<1x128xf32, #tpu.memory_space<any>>
      %c5_i32_88 = arith.constant 5 : i32
      %c0_i32_89 = arith.constant 0 : i32
      %147 = tpu.memref_slice %arg5[%2, %c5_i32_88, %c0_i32_89] : memref<2x16x128xf32, #tpu.memory_space<vmem>> -> memref<1x1x128xf32, #tpu.memory_space<vmem>>
      %148 = tpu.memref_squeeze %147 : memref<1x1x128xf32, #tpu.memory_space<vmem>> -> memref<1x128xf32, #tpu.memory_space<vmem>>
      %149 = tpu.memref_slice %arg6[%2] : memref<2x!tpu.dma_semaphore, #tpu.memory_space<semaphore_mem>> -> memref<1x!tpu.dma_semaphore, #tpu.memory_space<semaphore_mem>>
      %150 = tpu.memref_squeeze %149 : memref<1x!tpu.dma_semaphore, #tpu.memory_space<semaphore_mem>> -> memref<!tpu.dma_semaphore, #tpu.memory_space<semaphore_mem>>
      tpu.enqueue_dma source(%146 : memref<1x128xf32, #tpu.memory_space<any>>) target(%148 : memref<1x128xf32, #tpu.memory_space<vmem>>) target_semaphore(%150 : memref<!tpu.dma_semaphore, #tpu.memory_space<semaphore_mem>>)
      %c6_i32_90 = arith.constant 6 : i32
      %151 = arith.addi %90, %c6_i32_90 : i32
      %152 = arith.index_cast %151 : i32 to index
      %153 = memref.load %arg2[%152] : memref<16xi32, #tpu.memory_space<smem>>
      %c0_i32_91 = arith.constant 0 : i32
      %154 = arith.maxsi %153, %c0_i32_91 : i32
      %c31_i32_92 = arith.constant 31 : i32
      %155 = arith.minsi %154, %c31_i32_92 : i32
      %c0_i32_93 = arith.constant 0 : i32
      %156 = tpu.memref_slice %arg3[%155, %c0_i32_93] : memref<32x128xf32, #tpu.memory_space<any>> -> memref<1x128xf32, #tpu.memory_space<any>>
      %c6_i32_94 = arith.constant 6 : i32
      %c0_i32_95 = arith.constant 0 : i32
      %157 = tpu.memref_slice %arg5[%2, %c6_i32_94, %c0_i32_95] : memref<2x16x128xf32, #tpu.memory_space<vmem>> -> memref<1x1x128xf32, #tpu.memory_space<vmem>>
      %158 = tpu.memref_squeeze %157 : memref<1x1x128xf32, #tpu.memory_space<vmem>> -> memref<1x128xf32, #tpu.memory_space<vmem>>
      %159 = tpu.memref_slice %arg6[%2] : memref<2x!tpu.dma_semaphore, #tpu.memory_space<semaphore_mem>> -> memref<1x!tpu.dma_semaphore, #tpu.memory_space<semaphore_mem>>
      %160 = tpu.memref_squeeze %159 : memref<1x!tpu.dma_semaphore, #tpu.memory_space<semaphore_mem>> -> memref<!tpu.dma_semaphore, #tpu.memory_space<semaphore_mem>>
      tpu.enqueue_dma source(%156 : memref<1x128xf32, #tpu.memory_space<any>>) target(%158 : memref<1x128xf32, #tpu.memory_space<vmem>>) target_semaphore(%160 : memref<!tpu.dma_semaphore, #tpu.memory_space<semaphore_mem>>)
      %c7_i32_96 = arith.constant 7 : i32
      %161 = arith.addi %90, %c7_i32_96 : i32
      %162 = arith.index_cast %161 : i32 to index
      %163 = memref.load %arg2[%162] : memref<16xi32, #tpu.memory_space<smem>>
      %c0_i32_97 = arith.constant 0 : i32
      %164 = arith.maxsi %163, %c0_i32_97 : i32
      %c31_i32_98 = arith.constant 31 : i32
      %165 = arith.minsi %164, %c31_i32_98 : i32
      %c0_i32_99 = arith.constant 0 : i32
      %166 = tpu.memref_slice %arg3[%165, %c0_i32_99] : memref<32x128xf32, #tpu.memory_space<any>> -> memref<1x128xf32, #tpu.memory_space<any>>
      %c7_i32_100 = arith.constant 7 : i32
      %c0_i32_101 = arith.constant 0 : i32
      %167 = tpu.memref_slice %arg5[%2, %c7_i32_100, %c0_i32_101] : memref<2x16x128xf32, #tpu.memory_space<vmem>> -> memref<1x1x128xf32, #tpu.memory_space<vmem>>
      %168 = tpu.memref_squeeze %167 : memref<1x1x128xf32, #tpu.memory_space<vmem>> -> memref<1x128xf32, #tpu.memory_space<vmem>>
      %169 = tpu.memref_slice %arg6[%2] : memref<2x!tpu.dma_semaphore, #tpu.memory_space<semaphore_mem>> -> memref<1x!tpu.dma_semaphore, #tpu.memory_space<semaphore_mem>>
      %170 = tpu.memref_squeeze %169 : memref<1x!tpu.dma_semaphore, #tpu.memory_space<semaphore_mem>> -> memref<!tpu.dma_semaphore, #tpu.memory_space<semaphore_mem>>
      tpu.enqueue_dma source(%166 : memref<1x128xf32, #tpu.memory_space<any>>) target(%168 : memref<1x128xf32, #tpu.memory_space<vmem>>) target_semaphore(%170 : memref<!tpu.dma_semaphore, #tpu.memory_space<semaphore_mem>>)
      %c8_i32_102 = arith.constant 8 : i32
      %171 = arith.addi %90, %c8_i32_102 : i32
      %172 = arith.index_cast %171 : i32 to index
      %173 = memref.load %arg2[%172] : memref<16xi32, #tpu.memory_space<smem>>
      %c0_i32_103 = arith.constant 0 : i32
      %174 = arith.maxsi %173, %c0_i32_103 : i32
      %c31_i32_104 = arith.constant 31 : i32
      %175 = arith.minsi %174, %c31_i32_104 : i32
      %c0_i32_105 = arith.constant 0 : i32
      %176 = tpu.memref_slice %arg3[%175, %c0_i32_105] : memref<32x128xf32, #tpu.memory_space<any>> -> memref<1x128xf32, #tpu.memory_space<any>>
      %c8_i32_106 = arith.constant 8 : i32
      %c0_i32_107 = arith.constant 0 : i32
      %177 = tpu.memref_slice %arg5[%2, %c8_i32_106, %c0_i32_107] : memref<2x16x128xf32, #tpu.memory_space<vmem>> -> memref<1x1x128xf32, #tpu.memory_space<vmem>>
      %178 = tpu.memref_squeeze %177 : memref<1x1x128xf32, #tpu.memory_space<vmem>> -> memref<1x128xf32, #tpu.memory_space<vmem>>
      %179 = tpu.memref_slice %arg6[%2] : memref<2x!tpu.dma_semaphore, #tpu.memory_space<semaphore_mem>> -> memref<1x!tpu.dma_semaphore, #tpu.memory_space<semaphore_mem>>
      %180 = tpu.memref_squeeze %179 : memref<1x!tpu.dma_semaphore, #tpu.memory_space<semaphore_mem>> -> memref<!tpu.dma_semaphore, #tpu.memory_space<semaphore_mem>>
      tpu.enqueue_dma source(%176 : memref<1x128xf32, #tpu.memory_space<any>>) target(%178 : memref<1x128xf32, #tpu.memory_space<vmem>>) target_semaphore(%180 : memref<!tpu.dma_semaphore, #tpu.memory_space<semaphore_mem>>)
      %c9_i32_108 = arith.constant 9 : i32
      %181 = arith.addi %90, %c9_i32_108 : i32
      %182 = arith.index_cast %181 : i32 to index
      %183 = memref.load %arg2[%182] : memref<16xi32, #tpu.memory_space<smem>>
      %c0_i32_109 = arith.constant 0 : i32
      %184 = arith.maxsi %183, %c0_i32_109 : i32
      %c31_i32_110 = arith.constant 31 : i32
      %185 = arith.minsi %184, %c31_i32_110 : i32
      %c0_i32_111 = arith.constant 0 : i32
      %186 = tpu.memref_slice %arg3[%185, %c0_i32_111] : memref<32x128xf32, #tpu.memory_space<any>> -> memref<1x128xf32, #tpu.memory_space<any>>
      %c9_i32_112 = arith.constant 9 : i32
      %c0_i32_113 = arith.constant 0 : i32
      %187 = tpu.memref_slice %arg5[%2, %c9_i32_112, %c0_i32_113] : memref<2x16x128xf32, #tpu.memory_space<vmem>> -> memref<1x1x128xf32, #tpu.memory_space<vmem>>
      %188 = tpu.memref_squeeze %187 : memref<1x1x128xf32, #tpu.memory_space<vmem>> -> memref<1x128xf32, #tpu.memory_space<vmem>>
      %189 = tpu.memref_slice %arg6[%2] : memref<2x!tpu.dma_semaphore, #tpu.memory_space<semaphore_mem>> -> memref<1x!tpu.dma_semaphore, #tpu.memory_space<semaphore_mem>>
      %190 = tpu.memref_squeeze %189 : memref<1x!tpu.dma_semaphore, #tpu.memory_space<semaphore_mem>> -> memref<!tpu.dma_semaphore, #tpu.memory_space<semaphore_mem>>
      tpu.enqueue_dma source(%186 : memref<1x128xf32, #tpu.memory_space<any>>) target(%188 : memref<1x128xf32, #tpu.memory_space<vmem>>) target_semaphore(%190 : memref<!tpu.dma_semaphore, #tpu.memory_space<semaphore_mem>>)
      %c10_i32_114 = arith.constant 10 : i32
      %191 = arith.addi %90, %c10_i32_114 : i32
      %192 = arith.index_cast %191 : i32 to index
      %193 = memref.load %arg2[%192] : memref<16xi32, #tpu.memory_space<smem>>
      %c0_i32_115 = arith.constant 0 : i32
      %194 = arith.maxsi %193, %c0_i32_115 : i32
      %c31_i32_116 = arith.constant 31 : i32
      %195 = arith.minsi %194, %c31_i32_116 : i32
      %c0_i32_117 = arith.constant 0 : i32
      %196 = tpu.memref_slice %arg3[%195, %c0_i32_117] : memref<32x128xf32, #tpu.memory_space<any>> -> memref<1x128xf32, #tpu.memory_space<any>>
      %c10_i32_118 = arith.constant 10 : i32
      %c0_i32_119 = arith.constant 0 : i32
      %197 = tpu.memref_slice %arg5[%2, %c10_i32_118, %c0_i32_119] : memref<2x16x128xf32, #tpu.memory_space<vmem>> -> memref<1x1x128xf32, #tpu.memory_space<vmem>>
      %198 = tpu.memref_squeeze %197 : memref<1x1x128xf32, #tpu.memory_space<vmem>> -> memref<1x128xf32, #tpu.memory_space<vmem>>
      %199 = tpu.memref_slice %arg6[%2] : memref<2x!tpu.dma_semaphore, #tpu.memory_space<semaphore_mem>> -> memref<1x!tpu.dma_semaphore, #tpu.memory_space<semaphore_mem>>
      %200 = tpu.memref_squeeze %199 : memref<1x!tpu.dma_semaphore, #tpu.memory_space<semaphore_mem>> -> memref<!tpu.dma_semaphore, #tpu.memory_space<semaphore_mem>>
      tpu.enqueue_dma source(%196 : memref<1x128xf32, #tpu.memory_space<any>>) target(%198 : memref<1x128xf32, #tpu.memory_space<vmem>>) target_semaphore(%200 : memref<!tpu.dma_semaphore, #tpu.memory_space<semaphore_mem>>)
      %c11_i32_120 = arith.constant 11 : i32
      %201 = arith.addi %90, %c11_i32_120 : i32
      %202 = arith.index_cast %201 : i32 to index
      %203 = memref.load %arg2[%202] : memref<16xi32, #tpu.memory_space<smem>>
      %c0_i32_121 = arith.constant 0 : i32
      %204 = arith.maxsi %203, %c0_i32_121 : i32
      %c31_i32_122 = arith.constant 31 : i32
      %205 = arith.minsi %204, %c31_i32_122 : i32
      %c0_i32_123 = arith.constant 0 : i32
      %206 = tpu.memref_slice %arg3[%205, %c0_i32_123] : memref<32x128xf32, #tpu.memory_space<any>> -> memref<1x128xf32, #tpu.memory_space<any>>
      %c11_i32_124 = arith.constant 11 : i32
      %c0_i32_125 = arith.constant 0 : i32
      %207 = tpu.memref_slice %arg5[%2, %c11_i32_124, %c0_i32_125] : memref<2x16x128xf32, #tpu.memory_space<vmem>> -> memref<1x1x128xf32, #tpu.memory_space<vmem>>
      %208 = tpu.memref_squeeze %207 : memref<1x1x128xf32, #tpu.memory_space<vmem>> -> memref<1x128xf32, #tpu.memory_space<vmem>>
      %209 = tpu.memref_slice %arg6[%2] : memref<2x!tpu.dma_semaphore, #tpu.memory_space<semaphore_mem>> -> memref<1x!tpu.dma_semaphore, #tpu.memory_space<semaphore_mem>>
      %210 = tpu.memref_squeeze %209 : memref<1x!tpu.dma_semaphore, #tpu.memory_space<semaphore_mem>> -> memref<!tpu.dma_semaphore, #tpu.memory_space<semaphore_mem>>
      tpu.enqueue_dma source(%206 : memref<1x128xf32, #tpu.memory_space<any>>) target(%208 : memref<1x128xf32, #tpu.memory_space<vmem>>) target_semaphore(%210 : memref<!tpu.dma_semaphore, #tpu.memory_space<semaphore_mem>>)
      %c12_i32_126 = arith.constant 12 : i32
      %211 = arith.addi %90, %c12_i32_126 : i32
      %212 = arith.index_cast %211 : i32 to index
      %213 = memref.load %arg2[%212] : memref<16xi32, #tpu.memory_space<smem>>
      %c0_i32_127 = arith.constant 0 : i32
      %214 = arith.maxsi %213, %c0_i32_127 : i32
      %c31_i32_128 = arith.constant 31 : i32
      %215 = arith.minsi %214, %c31_i32_128 : i32
      %c0_i32_129 = arith.constant 0 : i32
      %216 = tpu.memref_slice %arg3[%215, %c0_i32_129] : memref<32x128xf32, #tpu.memory_space<any>> -> memref<1x128xf32, #tpu.memory_space<any>>
      %c12_i32_130 = arith.constant 12 : i32
      %c0_i32_131 = arith.constant 0 : i32
      %217 = tpu.memref_slice %arg5[%2, %c12_i32_130, %c0_i32_131] : memref<2x16x128xf32, #tpu.memory_space<vmem>> -> memref<1x1x128xf32, #tpu.memory_space<vmem>>
      %218 = tpu.memref_squeeze %217 : memref<1x1x128xf32, #tpu.memory_space<vmem>> -> memref<1x128xf32, #tpu.memory_space<vmem>>
      %219 = tpu.memref_slice %arg6[%2] : memref<2x!tpu.dma_semaphore, #tpu.memory_space<semaphore_mem>> -> memref<1x!tpu.dma_semaphore, #tpu.memory_space<semaphore_mem>>
      %220 = tpu.memref_squeeze %219 : memref<1x!tpu.dma_semaphore, #tpu.memory_space<semaphore_mem>> -> memref<!tpu.dma_semaphore, #tpu.memory_space<semaphore_mem>>
      tpu.enqueue_dma source(%216 : memref<1x128xf32, #tpu.memory_space<any>>) target(%218 : memref<1x128xf32, #tpu.memory_space<vmem>>) target_semaphore(%220 : memref<!tpu.dma_semaphore, #tpu.memory_space<semaphore_mem>>)
      %c13_i32_132 = arith.constant 13 : i32
      %221 = arith.addi %90, %c13_i32_132 : i32
      %222 = arith.index_cast %221 : i32 to index
      %223 = memref.load %arg2[%222] : memref<16xi32, #tpu.memory_space<smem>>
      %c0_i32_133 = arith.constant 0 : i32
      %224 = arith.maxsi %223, %c0_i32_133 : i32
      %c31_i32_134 = arith.constant 31 : i32
      %225 = arith.minsi %224, %c31_i32_134 : i32
      %c0_i32_135 = arith.constant 0 : i32
      %226 = tpu.memref_slice %arg3[%225, %c0_i32_135] : memref<32x128xf32, #tpu.memory_space<any>> -> memref<1x128xf32, #tpu.memory_space<any>>
      %c13_i32_136 = arith.constant 13 : i32
      %c0_i32_137 = arith.constant 0 : i32
      %227 = tpu.memref_slice %arg5[%2, %c13_i32_136, %c0_i32_137] : memref<2x16x128xf32, #tpu.memory_space<vmem>> -> memref<1x1x128xf32, #tpu.memory_space<vmem>>
      %228 = tpu.memref_squeeze %227 : memref<1x1x128xf32, #tpu.memory_space<vmem>> -> memref<1x128xf32, #tpu.memory_space<vmem>>
      %229 = tpu.memref_slice %arg6[%2] : memref<2x!tpu.dma_semaphore, #tpu.memory_space<semaphore_mem>> -> memref<1x!tpu.dma_semaphore, #tpu.memory_space<semaphore_mem>>
      %230 = tpu.memref_squeeze %229 : memref<1x!tpu.dma_semaphore, #tpu.memory_space<semaphore_mem>> -> memref<!tpu.dma_semaphore, #tpu.memory_space<semaphore_mem>>
      tpu.enqueue_dma source(%226 : memref<1x128xf32, #tpu.memory_space<any>>) target(%228 : memref<1x128xf32, #tpu.memory_space<vmem>>) target_semaphore(%230 : memref<!tpu.dma_semaphore, #tpu.memory_space<semaphore_mem>>)
      %c14_i32_138 = arith.constant 14 : i32
      %231 = arith.addi %90, %c14_i32_138 : i32
      %232 = arith.index_cast %231 : i32 to index
      %233 = memref.load %arg2[%232] : memref<16xi32, #tpu.memory_space<smem>>
      %c0_i32_139 = arith.constant 0 : i32
      %234 = arith.maxsi %233, %c0_i32_139 : i32
      %c31_i32_140 = arith.constant 31 : i32
      %235 = arith.minsi %234, %c31_i32_140 : i32
      %c0_i32_141 = arith.constant 0 : i32
      %236 = tpu.memref_slice %arg3[%235, %c0_i32_141] : memref<32x128xf32, #tpu.memory_space<any>> -> memref<1x128xf32, #tpu.memory_space<any>>
      %c14_i32_142 = arith.constant 14 : i32
      %c0_i32_143 = arith.constant 0 : i32
      %237 = tpu.memref_slice %arg5[%2, %c14_i32_142, %c0_i32_143] : memref<2x16x128xf32, #tpu.memory_space<vmem>> -> memref<1x1x128xf32, #tpu.memory_space<vmem>>
      %238 = tpu.memref_squeeze %237 : memref<1x1x128xf32, #tpu.memory_space<vmem>> -> memref<1x128xf32, #tpu.memory_space<vmem>>
      %239 = tpu.memref_slice %arg6[%2] : memref<2x!tpu.dma_semaphore, #tpu.memory_space<semaphore_mem>> -> memref<1x!tpu.dma_semaphore, #tpu.memory_space<semaphore_mem>>
      %240 = tpu.memref_squeeze %239 : memref<1x!tpu.dma_semaphore, #tpu.memory_space<semaphore_mem>> -> memref<!tpu.dma_semaphore, #tpu.memory_space<semaphore_mem>>
      tpu.enqueue_dma source(%236 : memref<1x128xf32, #tpu.memory_space<any>>) target(%238 : memref<1x128xf32, #tpu.memory_space<vmem>>) target_semaphore(%240 : memref<!tpu.dma_semaphore, #tpu.memory_space<semaphore_mem>>)
      %c15_i32_144 = arith.constant 15 : i32
      %241 = arith.addi %90, %c15_i32_144 : i32
      %242 = arith.index_cast %241 : i32 to index
      %243 = memref.load %arg2[%242] : memref<16xi32, #tpu.memory_space<smem>>
      %c0_i32_145 = arith.constant 0 : i32
      %244 = arith.maxsi %243, %c0_i32_145 : i32
      %c31_i32_146 = arith.constant 31 : i32
      %245 = arith.minsi %244, %c31_i32_146 : i32
      %c0_i32_147 = arith.constant 0 : i32
      %246 = tpu.memref_slice %arg3[%245, %c0_i32_147] : memref<32x128xf32, #tpu.memory_space<any>> -> memref<1x128xf32, #tpu.memory_space<any>>
      %c15_i32_148 = arith.constant 15 : i32
      %c0_i32_149 = arith.constant 0 : i32
      %247 = tpu.memref_slice %arg5[%2, %c15_i32_148, %c0_i32_149] : memref<2x16x128xf32, #tpu.memory_space<vmem>> -> memref<1x1x128xf32, #tpu.memory_space<vmem>>
      %248 = tpu.memref_squeeze %247 : memref<1x1x128xf32, #tpu.memory_space<vmem>> -> memref<1x128xf32, #tpu.memory_space<vmem>>
      %249 = tpu.memref_slice %arg6[%2] : memref<2x!tpu.dma_semaphore, #tpu.memory_space<semaphore_mem>> -> memref<1x!tpu.dma_semaphore, #tpu.memory_space<semaphore_mem>>
      %250 = tpu.memref_squeeze %249 : memref<1x!tpu.dma_semaphore, #tpu.memory_space<semaphore_mem>> -> memref<!tpu.dma_semaphore, #tpu.memory_space<semaphore_mem>>
      tpu.enqueue_dma source(%246 : memref<1x128xf32, #tpu.memory_space<any>>) target(%248 : memref<1x128xf32, #tpu.memory_space<vmem>>) target_semaphore(%250 : memref<!tpu.dma_semaphore, #tpu.memory_space<semaphore_mem>>)
    } else {
    }
    %c0_i32_2 = arith.constant 0 : i32
    %c0_i32_3 = arith.constant 0 : i32
    %6 = tpu.memref_slice %arg3[%c0_i32_2, %c0_i32_3] : memref<32x128xf32, #tpu.memory_space<any>> -> memref<1x128xf32, #tpu.memory_space<any>>
    %c0_i32_4 = arith.constant 0 : i32
    %c0_i32_5 = arith.constant 0 : i32
    %7 = tpu.memref_slice %arg5[%2, %c0_i32_4, %c0_i32_5] : memref<2x16x128xf32, #tpu.memory_space<vmem>> -> memref<1x1x128xf32, #tpu.memory_space<vmem>>
    %8 = tpu.memref_squeeze %7 : memref<1x1x128xf32, #tpu.memory_space<vmem>> -> memref<1x128xf32, #tpu.memory_space<vmem>>
    %9 = tpu.memref_slice %arg6[%2] : memref<2x!tpu.dma_semaphore, #tpu.memory_space<semaphore_mem>> -> memref<1x!tpu.dma_semaphore, #tpu.memory_space<semaphore_mem>>
    %10 = tpu.memref_squeeze %9 : memref<1x!tpu.dma_semaphore, #tpu.memory_space<semaphore_mem>> -> memref<!tpu.dma_semaphore, #tpu.memory_space<semaphore_mem>>
    tpu.wait_dma2 semaphore(%10 : memref<!tpu.dma_semaphore, #tpu.memory_space<semaphore_mem>>) src(%6 : memref<1x128xf32, #tpu.memory_space<any>>) dst(%8 : memref<1x128xf32, #tpu.memory_space<vmem>>)
    %c0_i32_6 = arith.constant 0 : i32
    %c0_i32_7 = arith.constant 0 : i32
    %11 = tpu.memref_slice %arg3[%c0_i32_6, %c0_i32_7] : memref<32x128xf32, #tpu.memory_space<any>> -> memref<1x128xf32, #tpu.memory_space<any>>
    %c1_i32_8 = arith.constant 1 : i32
    %c0_i32_9 = arith.constant 0 : i32
    %12 = tpu.memref_slice %arg5[%2, %c1_i32_8, %c0_i32_9] : memref<2x16x128xf32, #tpu.memory_space<vmem>> -> memref<1x1x128xf32, #tpu.memory_space<vmem>>
    %13 = tpu.memref_squeeze %12 : memref<1x1x128xf32, #tpu.memory_space<vmem>> -> memref<1x128xf32, #tpu.memory_space<vmem>>
    %14 = tpu.memref_slice %arg6[%2] : memref<2x!tpu.dma_semaphore, #tpu.memory_space<semaphore_mem>> -> memref<1x!tpu.dma_semaphore, #tpu.memory_space<semaphore_mem>>
    %15 = tpu.memref_squeeze %14 : memref<1x!tpu.dma_semaphore, #tpu.memory_space<semaphore_mem>> -> memref<!tpu.dma_semaphore, #tpu.memory_space<semaphore_mem>>
    tpu.wait_dma2 semaphore(%15 : memref<!tpu.dma_semaphore, #tpu.memory_space<semaphore_mem>>) src(%11 : memref<1x128xf32, #tpu.memory_space<any>>) dst(%13 : memref<1x128xf32, #tpu.memory_space<vmem>>)
    %c0_i32_10 = arith.constant 0 : i32
    %c0_i32_11 = arith.constant 0 : i32
    %16 = tpu.memref_slice %arg3[%c0_i32_10, %c0_i32_11] : memref<32x128xf32, #tpu.memory_space<any>> -> memref<1x128xf32, #tpu.memory_space<any>>
    %c2_i32 = arith.constant 2 : i32
    %c0_i32_12 = arith.constant 0 : i32
    %17 = tpu.memref_slice %arg5[%2, %c2_i32, %c0_i32_12] : memref<2x16x128xf32, #tpu.memory_space<vmem>> -> memref<1x1x128xf32, #tpu.memory_space<vmem>>
    %18 = tpu.memref_squeeze %17 : memref<1x1x128xf32, #tpu.memory_space<vmem>> -> memref<1x128xf32, #tpu.memory_space<vmem>>
    %19 = tpu.memref_slice %arg6[%2] : memref<2x!tpu.dma_semaphore, #tpu.memory_space<semaphore_mem>> -> memref<1x!tpu.dma_semaphore, #tpu.memory_space<semaphore_mem>>
    %20 = tpu.memref_squeeze %19 : memref<1x!tpu.dma_semaphore, #tpu.memory_space<semaphore_mem>> -> memref<!tpu.dma_semaphore, #tpu.memory_space<semaphore_mem>>
    tpu.wait_dma2 semaphore(%20 : memref<!tpu.dma_semaphore, #tpu.memory_space<semaphore_mem>>) src(%16 : memref<1x128xf32, #tpu.memory_space<any>>) dst(%18 : memref<1x128xf32, #tpu.memory_space<vmem>>)
    %c0_i32_13 = arith.constant 0 : i32
    %c0_i32_14 = arith.constant 0 : i32
    %21 = tpu.memref_slice %arg3[%c0_i32_13, %c0_i32_14] : memref<32x128xf32, #tpu.memory_space<any>> -> memref<1x128xf32, #tpu.memory_space<any>>
    %c3_i32 = arith.constant 3 : i32
    %c0_i32_15 = arith.constant 0 : i32
    %22 = tpu.memref_slice %arg5[%2, %c3_i32, %c0_i32_15] : memref<2x16x128xf32, #tpu.memory_space<vmem>> -> memref<1x1x128xf32, #tpu.memory_space<vmem>>
    %23 = tpu.memref_squeeze %22 : memref<1x1x128xf32, #tpu.memory_space<vmem>> -> memref<1x128xf32, #tpu.memory_space<vmem>>
    %24 = tpu.memref_slice %arg6[%2] : memref<2x!tpu.dma_semaphore, #tpu.memory_space<semaphore_mem>> -> memref<1x!tpu.dma_semaphore, #tpu.memory_space<semaphore_mem>>
    %25 = tpu.memref_squeeze %24 : memref<1x!tpu.dma_semaphore, #tpu.memory_space<semaphore_mem>> -> memref<!tpu.dma_semaphore, #tpu.memory_space<semaphore_mem>>
    tpu.wait_dma2 semaphore(%25 : memref<!tpu.dma_semaphore, #tpu.memory_space<semaphore_mem>>) src(%21 : memref<1x128xf32, #tpu.memory_space<any>>) dst(%23 : memref<1x128xf32, #tpu.memory_space<vmem>>)
    %c0_i32_16 = arith.constant 0 : i32
    %c0_i32_17 = arith.constant 0 : i32
    %26 = tpu.memref_slice %arg3[%c0_i32_16, %c0_i32_17] : memref<32x128xf32, #tpu.memory_space<any>> -> memref<1x128xf32, #tpu.memory_space<any>>
    %c4_i32 = arith.constant 4 : i32
    %c0_i32_18 = arith.constant 0 : i32
    %27 = tpu.memref_slice %arg5[%2, %c4_i32, %c0_i32_18] : memref<2x16x128xf32, #tpu.memory_space<vmem>> -> memref<1x1x128xf32, #tpu.memory_space<vmem>>
    %28 = tpu.memref_squeeze %27 : memref<1x1x128xf32, #tpu.memory_space<vmem>> -> memref<1x128xf32, #tpu.memory_space<vmem>>
    %29 = tpu.memref_slice %arg6[%2] : memref<2x!tpu.dma_semaphore, #tpu.memory_space<semaphore_mem>> -> memref<1x!tpu.dma_semaphore, #tpu.memory_space<semaphore_mem>>
    %30 = tpu.memref_squeeze %29 : memref<1x!tpu.dma_semaphore, #tpu.memory_space<semaphore_mem>> -> memref<!tpu.dma_semaphore, #tpu.memory_space<semaphore_mem>>
    tpu.wait_dma2 semaphore(%30 : memref<!tpu.dma_semaphore, #tpu.memory_space<semaphore_mem>>) src(%26 : memref<1x128xf32, #tpu.memory_space<any>>) dst(%28 : memref<1x128xf32, #tpu.memory_space<vmem>>)
    %c0_i32_19 = arith.constant 0 : i32
    %c0_i32_20 = arith.constant 0 : i32
    %31 = tpu.memref_slice %arg3[%c0_i32_19, %c0_i32_20] : memref<32x128xf32, #tpu.memory_space<any>> -> memref<1x128xf32, #tpu.memory_space<any>>
    %c5_i32 = arith.constant 5 : i32
    %c0_i32_21 = arith.constant 0 : i32
    %32 = tpu.memref_slice %arg5[%2, %c5_i32, %c0_i32_21] : memref<2x16x128xf32, #tpu.memory_space<vmem>> -> memref<1x1x128xf32, #tpu.memory_space<vmem>>
    %33 = tpu.memref_squeeze %32 : memref<1x1x128xf32, #tpu.memory_space<vmem>> -> memref<1x128xf32, #tpu.memory_space<vmem>>
    %34 = tpu.memref_slice %arg6[%2] : memref<2x!tpu.dma_semaphore, #tpu.memory_space<semaphore_mem>> -> memref<1x!tpu.dma_semaphore, #tpu.memory_space<semaphore_mem>>
    %35 = tpu.memref_squeeze %34 : memref<1x!tpu.dma_semaphore, #tpu.memory_space<semaphore_mem>> -> memref<!tpu.dma_semaphore, #tpu.memory_space<semaphore_mem>>
    tpu.wait_dma2 semaphore(%35 : memref<!tpu.dma_semaphore, #tpu.memory_space<semaphore_mem>>) src(%31 : memref<1x128xf32, #tpu.memory_space<any>>) dst(%33 : memref<1x128xf32, #tpu.memory_space<vmem>>)
    %c0_i32_22 = arith.constant 0 : i32
    %c0_i32_23 = arith.constant 0 : i32
    %36 = tpu.memref_slice %arg3[%c0_i32_22, %c0_i32_23] : memref<32x128xf32, #tpu.memory_space<any>> -> memref<1x128xf32, #tpu.memory_space<any>>
    %c6_i32 = arith.constant 6 : i32
    %c0_i32_24 = arith.constant 0 : i32
    %37 = tpu.memref_slice %arg5[%2, %c6_i32, %c0_i32_24] : memref<2x16x128xf32, #tpu.memory_space<vmem>> -> memref<1x1x128xf32, #tpu.memory_space<vmem>>
    %38 = tpu.memref_squeeze %37 : memref<1x1x128xf32, #tpu.memory_space<vmem>> -> memref<1x128xf32, #tpu.memory_space<vmem>>
    %39 = tpu.memref_slice %arg6[%2] : memref<2x!tpu.dma_semaphore, #tpu.memory_space<semaphore_mem>> -> memref<1x!tpu.dma_semaphore, #tpu.memory_space<semaphore_mem>>
    %40 = tpu.memref_squeeze %39 : memref<1x!tpu.dma_semaphore, #tpu.memory_space<semaphore_mem>> -> memref<!tpu.dma_semaphore, #tpu.memory_space<semaphore_mem>>
    tpu.wait_dma2 semaphore(%40 : memref<!tpu.dma_semaphore, #tpu.memory_space<semaphore_mem>>) src(%36 : memref<1x128xf32, #tpu.memory_space<any>>) dst(%38 : memref<1x128xf32, #tpu.memory_space<vmem>>)
    %c0_i32_25 = arith.constant 0 : i32
    %c0_i32_26 = arith.constant 0 : i32
    %41 = tpu.memref_slice %arg3[%c0_i32_25, %c0_i32_26] : memref<32x128xf32, #tpu.memory_space<any>> -> memref<1x128xf32, #tpu.memory_space<any>>
    %c7_i32 = arith.constant 7 : i32
    %c0_i32_27 = arith.constant 0 : i32
    %42 = tpu.memref_slice %arg5[%2, %c7_i32, %c0_i32_27] : memref<2x16x128xf32, #tpu.memory_space<vmem>> -> memref<1x1x128xf32, #tpu.memory_space<vmem>>
    %43 = tpu.memref_squeeze %42 : memref<1x1x128xf32, #tpu.memory_space<vmem>> -> memref<1x128xf32, #tpu.memory_space<vmem>>
    %44 = tpu.memref_slice %arg6[%2] : memref<2x!tpu.dma_semaphore, #tpu.memory_space<semaphore_mem>> -> memref<1x!tpu.dma_semaphore, #tpu.memory_space<semaphore_mem>>
    %45 = tpu.memref_squeeze %44 : memref<1x!tpu.dma_semaphore, #tpu.memory_space<semaphore_mem>> -> memref<!tpu.dma_semaphore, #tpu.memory_space<semaphore_mem>>
    tpu.wait_dma2 semaphore(%45 : memref<!tpu.dma_semaphore, #tpu.memory_space<semaphore_mem>>) src(%41 : memref<1x128xf32, #tpu.memory_space<any>>) dst(%43 : memref<1x128xf32, #tpu.memory_space<vmem>>)
    %c0_i32_28 = arith.constant 0 : i32
    %c0_i32_29 = arith.constant 0 : i32
    %46 = tpu.memref_slice %arg3[%c0_i32_28, %c0_i32_29] : memref<32x128xf32, #tpu.memory_space<any>> -> memref<1x128xf32, #tpu.memory_space<any>>
    %c8_i32 = arith.constant 8 : i32
    %c0_i32_30 = arith.constant 0 : i32
    %47 = tpu.memref_slice %arg5[%2, %c8_i32, %c0_i32_30] : memref<2x16x128xf32, #tpu.memory_space<vmem>> -> memref<1x1x128xf32, #tpu.memory_space<vmem>>
    %48 = tpu.memref_squeeze %47 : memref<1x1x128xf32, #tpu.memory_space<vmem>> -> memref<1x128xf32, #tpu.memory_space<vmem>>
    %49 = tpu.memref_slice %arg6[%2] : memref<2x!tpu.dma_semaphore, #tpu.memory_space<semaphore_mem>> -> memref<1x!tpu.dma_semaphore, #tpu.memory_space<semaphore_mem>>
    %50 = tpu.memref_squeeze %49 : memref<1x!tpu.dma_semaphore, #tpu.memory_space<semaphore_mem>> -> memref<!tpu.dma_semaphore, #tpu.memory_space<semaphore_mem>>
    tpu.wait_dma2 semaphore(%50 : memref<!tpu.dma_semaphore, #tpu.memory_space<semaphore_mem>>) src(%46 : memref<1x128xf32, #tpu.memory_space<any>>) dst(%48 : memref<1x128xf32, #tpu.memory_space<vmem>>)
    %c0_i32_31 = arith.constant 0 : i32
    %c0_i32_32 = arith.constant 0 : i32
    %51 = tpu.memref_slice %arg3[%c0_i32_31, %c0_i32_32] : memref<32x128xf32, #tpu.memory_space<any>> -> memref<1x128xf32, #tpu.memory_space<any>>
    %c9_i32 = arith.constant 9 : i32
    %c0_i32_33 = arith.constant 0 : i32
    %52 = tpu.memref_slice %arg5[%2, %c9_i32, %c0_i32_33] : memref<2x16x128xf32, #tpu.memory_space<vmem>> -> memref<1x1x128xf32, #tpu.memory_space<vmem>>
    %53 = tpu.memref_squeeze %52 : memref<1x1x128xf32, #tpu.memory_space<vmem>> -> memref<1x128xf32, #tpu.memory_space<vmem>>
    %54 = tpu.memref_slice %arg6[%2] : memref<2x!tpu.dma_semaphore, #tpu.memory_space<semaphore_mem>> -> memref<1x!tpu.dma_semaphore, #tpu.memory_space<semaphore_mem>>
    %55 = tpu.memref_squeeze %54 : memref<1x!tpu.dma_semaphore, #tpu.memory_space<semaphore_mem>> -> memref<!tpu.dma_semaphore, #tpu.memory_space<semaphore_mem>>
    tpu.wait_dma2 semaphore(%55 : memref<!tpu.dma_semaphore, #tpu.memory_space<semaphore_mem>>) src(%51 : memref<1x128xf32, #tpu.memory_space<any>>) dst(%53 : memref<1x128xf32, #tpu.memory_space<vmem>>)
    %c0_i32_34 = arith.constant 0 : i32
    %c0_i32_35 = arith.constant 0 : i32
    %56 = tpu.memref_slice %arg3[%c0_i32_34, %c0_i32_35] : memref<32x128xf32, #tpu.memory_space<any>> -> memref<1x128xf32, #tpu.memory_space<any>>
    %c10_i32 = arith.constant 10 : i32
    %c0_i32_36 = arith.constant 0 : i32
    %57 = tpu.memref_slice %arg5[%2, %c10_i32, %c0_i32_36] : memref<2x16x128xf32, #tpu.memory_space<vmem>> -> memref<1x1x128xf32, #tpu.memory_space<vmem>>
    %58 = tpu.memref_squeeze %57 : memref<1x1x128xf32, #tpu.memory_space<vmem>> -> memref<1x128xf32, #tpu.memory_space<vmem>>
    %59 = tpu.memref_slice %arg6[%2] : memref<2x!tpu.dma_semaphore, #tpu.memory_space<semaphore_mem>> -> memref<1x!tpu.dma_semaphore, #tpu.memory_space<semaphore_mem>>
    %60 = tpu.memref_squeeze %59 : memref<1x!tpu.dma_semaphore, #tpu.memory_space<semaphore_mem>> -> memref<!tpu.dma_semaphore, #tpu.memory_space<semaphore_mem>>
    tpu.wait_dma2 semaphore(%60 : memref<!tpu.dma_semaphore, #tpu.memory_space<semaphore_mem>>) src(%56 : memref<1x128xf32, #tpu.memory_space<any>>) dst(%58 : memref<1x128xf32, #tpu.memory_space<vmem>>)
    %c0_i32_37 = arith.constant 0 : i32
    %c0_i32_38 = arith.constant 0 : i32
    %61 = tpu.memref_slice %arg3[%c0_i32_37, %c0_i32_38] : memref<32x128xf32, #tpu.memory_space<any>> -> memref<1x128xf32, #tpu.memory_space<any>>
    %c11_i32 = arith.constant 11 : i32
    %c0_i32_39 = arith.constant 0 : i32
    %62 = tpu.memref_slice %arg5[%2, %c11_i32, %c0_i32_39] : memref<2x16x128xf32, #tpu.memory_space<vmem>> -> memref<1x1x128xf32, #tpu.memory_space<vmem>>
    %63 = tpu.memref_squeeze %62 : memref<1x1x128xf32, #tpu.memory_space<vmem>> -> memref<1x128xf32, #tpu.memory_space<vmem>>
    %64 = tpu.memref_slice %arg6[%2] : memref<2x!tpu.dma_semaphore, #tpu.memory_space<semaphore_mem>> -> memref<1x!tpu.dma_semaphore, #tpu.memory_space<semaphore_mem>>
    %65 = tpu.memref_squeeze %64 : memref<1x!tpu.dma_semaphore, #tpu.memory_space<semaphore_mem>> -> memref<!tpu.dma_semaphore, #tpu.memory_space<semaphore_mem>>
    tpu.wait_dma2 semaphore(%65 : memref<!tpu.dma_semaphore, #tpu.memory_space<semaphore_mem>>) src(%61 : memref<1x128xf32, #tpu.memory_space<any>>) dst(%63 : memref<1x128xf32, #tpu.memory_space<vmem>>)
    %c0_i32_40 = arith.constant 0 : i32
    %c0_i32_41 = arith.constant 0 : i32
    %66 = tpu.memref_slice %arg3[%c0_i32_40, %c0_i32_41] : memref<32x128xf32, #tpu.memory_space<any>> -> memref<1x128xf32, #tpu.memory_space<any>>
    %c12_i32 = arith.constant 12 : i32
    %c0_i32_42 = arith.constant 0 : i32
    %67 = tpu.memref_slice %arg5[%2, %c12_i32, %c0_i32_42] : memref<2x16x128xf32, #tpu.memory_space<vmem>> -> memref<1x1x128xf32, #tpu.memory_space<vmem>>
    %68 = tpu.memref_squeeze %67 : memref<1x1x128xf32, #tpu.memory_space<vmem>> -> memref<1x128xf32, #tpu.memory_space<vmem>>
    %69 = tpu.memref_slice %arg6[%2] : memref<2x!tpu.dma_semaphore, #tpu.memory_space<semaphore_mem>> -> memref<1x!tpu.dma_semaphore, #tpu.memory_space<semaphore_mem>>
    %70 = tpu.memref_squeeze %69 : memref<1x!tpu.dma_semaphore, #tpu.memory_space<semaphore_mem>> -> memref<!tpu.dma_semaphore, #tpu.memory_space<semaphore_mem>>
    tpu.wait_dma2 semaphore(%70 : memref<!tpu.dma_semaphore, #tpu.memory_space<semaphore_mem>>) src(%66 : memref<1x128xf32, #tpu.memory_space<any>>) dst(%68 : memref<1x128xf32, #tpu.memory_space<vmem>>)
    %c0_i32_43 = arith.constant 0 : i32
    %c0_i32_44 = arith.constant 0 : i32
    %71 = tpu.memref_slice %arg3[%c0_i32_43, %c0_i32_44] : memref<32x128xf32, #tpu.memory_space<any>> -> memref<1x128xf32, #tpu.memory_space<any>>
    %c13_i32 = arith.constant 13 : i32
    %c0_i32_45 = arith.constant 0 : i32
    %72 = tpu.memref_slice %arg5[%2, %c13_i32, %c0_i32_45] : memref<2x16x128xf32, #tpu.memory_space<vmem>> -> memref<1x1x128xf32, #tpu.memory_space<vmem>>
    %73 = tpu.memref_squeeze %72 : memref<1x1x128xf32, #tpu.memory_space<vmem>> -> memref<1x128xf32, #tpu.memory_space<vmem>>
    %74 = tpu.memref_slice %arg6[%2] : memref<2x!tpu.dma_semaphore, #tpu.memory_space<semaphore_mem>> -> memref<1x!tpu.dma_semaphore, #tpu.memory_space<semaphore_mem>>
    %75 = tpu.memref_squeeze %74 : memref<1x!tpu.dma_semaphore, #tpu.memory_space<semaphore_mem>> -> memref<!tpu.dma_semaphore, #tpu.memory_space<semaphore_mem>>
    tpu.wait_dma2 semaphore(%75 : memref<!tpu.dma_semaphore, #tpu.memory_space<semaphore_mem>>) src(%71 : memref<1x128xf32, #tpu.memory_space<any>>) dst(%73 : memref<1x128xf32, #tpu.memory_space<vmem>>)
    %c0_i32_46 = arith.constant 0 : i32
    %c0_i32_47 = arith.constant 0 : i32
    %76 = tpu.memref_slice %arg3[%c0_i32_46, %c0_i32_47] : memref<32x128xf32, #tpu.memory_space<any>> -> memref<1x128xf32, #tpu.memory_space<any>>
    %c14_i32 = arith.constant 14 : i32
    %c0_i32_48 = arith.constant 0 : i32
    %77 = tpu.memref_slice %arg5[%2, %c14_i32, %c0_i32_48] : memref<2x16x128xf32, #tpu.memory_space<vmem>> -> memref<1x1x128xf32, #tpu.memory_space<vmem>>
    %78 = tpu.memref_squeeze %77 : memref<1x1x128xf32, #tpu.memory_space<vmem>> -> memref<1x128xf32, #tpu.memory_space<vmem>>
    %79 = tpu.memref_slice %arg6[%2] : memref<2x!tpu.dma_semaphore, #tpu.memory_space<semaphore_mem>> -> memref<1x!tpu.dma_semaphore, #tpu.memory_space<semaphore_mem>>
    %80 = tpu.memref_squeeze %79 : memref<1x!tpu.dma_semaphore, #tpu.memory_space<semaphore_mem>> -> memref<!tpu.dma_semaphore, #tpu.memory_space<semaphore_mem>>
    tpu.wait_dma2 semaphore(%80 : memref<!tpu.dma_semaphore, #tpu.memory_space<semaphore_mem>>) src(%76 : memref<1x128xf32, #tpu.memory_space<any>>) dst(%78 : memref<1x128xf32, #tpu.memory_space<vmem>>)
    %c0_i32_49 = arith.constant 0 : i32
    %c0_i32_50 = arith.constant 0 : i32
    %81 = tpu.memref_slice %arg3[%c0_i32_49, %c0_i32_50] : memref<32x128xf32, #tpu.memory_space<any>> -> memref<1x128xf32, #tpu.memory_space<any>>
    %c15_i32 = arith.constant 15 : i32
    %c0_i32_51 = arith.constant 0 : i32
    %82 = tpu.memref_slice %arg5[%2, %c15_i32, %c0_i32_51] : memref<2x16x128xf32, #tpu.memory_space<vmem>> -> memref<1x1x128xf32, #tpu.memory_space<vmem>>
    %83 = tpu.memref_squeeze %82 : memref<1x1x128xf32, #tpu.memory_space<vmem>> -> memref<1x128xf32, #tpu.memory_space<vmem>>
    %84 = tpu.memref_slice %arg6[%2] : memref<2x!tpu.dma_semaphore, #tpu.memory_space<semaphore_mem>> -> memref<1x!tpu.dma_semaphore, #tpu.memory_space<semaphore_mem>>
    %85 = tpu.memref_squeeze %84 : memref<1x!tpu.dma_semaphore, #tpu.memory_space<semaphore_mem>> -> memref<!tpu.dma_semaphore, #tpu.memory_space<semaphore_mem>>
    tpu.wait_dma2 semaphore(%85 : memref<!tpu.dma_semaphore, #tpu.memory_space<semaphore_mem>>) src(%81 : memref<1x128xf32, #tpu.memory_space<any>>) dst(%83 : memref<1x128xf32, #tpu.memory_space<vmem>>)
    %86 = arith.index_cast %2 : i32 to index
    %c0 = arith.constant 0 : index
    %c0_52 = arith.constant 0 : index
    %87 = vector.load %arg5[%86, %c0, %c0_52] : memref<2x16x128xf32, #tpu.memory_space<vmem>>, vector<1x16x128xf32>
    %88 = vector.shape_cast %87 : vector<1x16x128xf32> to vector<16x128xf32>
    %c0_53 = arith.constant 0 : index
    %c0_54 = arith.constant 0 : index
    %89 = vector.load %arg4[%c0_53, %c0_54] : memref<16x128xf32, #tpu.memory_space<vmem>>, vector<16x128xf32>
    tpu.vector_store %arg4[%c0_53, %c0_54], %88 {strides = array<i32>} : memref<16x128xf32, #tpu.memory_space<vmem>>, vector<16x128xf32>,
    return
  }
  func.func @transform_1(%arg0: i32, %arg1: i32, %arg2: memref<16xi32, #tpu.memory_space<smem>>) -> (i32, i32) {
    %c1_i32 = arith.constant 1 : i32
    %0 = arith.muli %arg0, %c1_i32 : i32
    %1 = arith.addi %0, %arg1 : i32
    %c0_i32 = arith.constant 0 : i32
    %c0_i32_0 = arith.constant 0 : i32
    return %1, %c0_i32 : i32, i32
  }
}

</mosaic_0001>

<bundles_post_ra>
// kernel: tpu_custom_call.1
= control target key start
LH: loop header
LB: loop body
LE: loop exit
PB: predicated region body
PF: predicated region fallthrough
CT: control target
= control target key end

     0   :  { %s1485_s0 = inlined_call_operand.hbm [shape: s32[16], index: 0, kind: input, shape index: {}]   ;;  %s1486_s1 = inlined_call_operand.hbm [shape: f32[32,128], index: 1, kind: input, shape index: {}]   ;;  %s1487_s2 = inlined_call_operand.hbm [shape: f32[16,128], index: 2, kind: output, shape index: {}]  }
   0x1   :  { %s678_s11 = scalar_lea.hbm %s1485_s0, 16 }
   0x2   :  { %p679_p0 = scmp.ne.s32.totalorder %s1485_s0, %s678_s11  ;;  %p682_p1 = scmp.lt.u32.totalorder %s678_s11, %s1485_s0 }
   0x4   :  { %p684_p2 = pnand %p682_p1, %p679_p0 }
   0x6   :  { %687 = shalt.err (!%p684_p2)  }
   0x7   :  { %s1100_s16 = smov [#allocation5]  }
   0x8   :  { %8 = dma.hbm_to_smem %s1485_s0, 16, %s1100_s16, [#allocation4] }
   0x9   :  { %1094 = dma.done.wait [#allocation4], 16 }
   0xa   :  { %1095 = vsyncadd [#allocation4], 4294967280 }
   0xb   :  { %10 = sfence }
   0xc   :  { %11 = vsyncpa [#allocation7], 0  ;;  %s21_s19 = sld [smem:[#allocation5]]  ;;  %s1101_s20 = smov [#allocation2]  }
   0xd   :  { %s38_s21 = sshll.u32 %s1101_s20, 4  ;;  %s519_s22 = sld [smem:[#allocation5 + $0x1]]  ;;  %s1147_s21 = int_to_ptr.vmem [resolvable:$true] %s38_s21 }
   0xe   :  { %s1102_s23 = smov [#allocation2 + $0x1]   ;;  %s1149_s25 = sld [smem:[#allocation5 + $0x2]] }
   0xf   :  { %s59_s24 = sshll.u32 %s1102_s23, 4  ;;  %s1103_s26 = smov [#allocation2 + $0x2]   ;;  %s1151_s24 = int_to_ptr.vmem [resolvable:$true] %s59_s24 }
  0x10   :  { %s1153_s27 = sshll.u32 %s1103_s26, 4  ;;  %s1155_s0 = sld [smem:[#allocation5 + $0x3]]  ;;  %s81_s27 = int_to_ptr.vmem [resolvable:$true] %s1153_s27 }
  0x11   :  { %s1164_s8 = scalar_lea.hbm %s1486_s1, 512 }
  0x12   :  { %p22_p3 = scmp.gt.s32.totalorder %s21_s19, 0  ;;  %p513_p4 = scmp.lt.s32.totalorder %s21_s19, 31 }
  0x13   :  { %p44_p5 = scmp.gt.s32.totalorder %s519_s22, 0  ;;  %p520_p6 = scmp.lt.s32.totalorder %s519_s22, 31 }
  0x14   :  { %s1492_s19 = smov (!%p22_p3, %s21_s19), 0  ;;  %p65_p7 = scmp.gt.s32.totalorder %s1149_s25, 0 }
  0x15   :  { %s1494_s22 = smov (!%p44_p5, %s519_s22), 0  ;;  %s1496_s19 = smov (!%p513_p4, %s1492_s19), 31 }
  0x16   :  { %s1498_s22 = smov (!%p520_p6, %s1494_s22), 31  ;;  %s518_s28 = sshll.u32 %s1496_s19, 4 }
  0x17   :  { %s27_s3 = scalar_lea.hbm %s1486_s1, %s518_s28  ;;  %s525_s4 = sshll.u32 %s1498_s22, 4 }
  0x18   :  { %s688_s5 = scalar_lea.hbm %s27_s3, 16  ;;  %p691_p9 = scmp.lt.u32.totalorder %s27_s3, %s1486_s1 }
  0x19   :  { %p689_p8 = scmp.ne.s32.totalorder %s27_s3, %s688_s5  ;;  %p692_p10 = scmp.lt.u32.totalorder %s1164_s8, %s688_s5 }
  0x1a   :  { %p694_p12 = scmp.lt.u32.totalorder %s688_s5, %s27_s3 }
  0x1b   :  { %p693_p11 = por %p692_p10, %p691_p9 }
  0x1d   :  { %p695_p13 = por %p694_p12, %p693_p11 }
  0x1f   :  { %p696_p0 = pnand %p695_p13, %p689_p8 }
  0x21   :  { %699 = shalt.err (!%p696_p0)  }
  0x22   :  { %s700_s11 = scalar_lea.vmem %s1147_s21, 16  ;;  %s1173_s12 = scalar_lea.vmem %s1147_s21, 512 }
  0x23   :  { %p701_p1 = scmp.ne.s32.totalorder %s1147_s21, %s700_s11  ;;  %p705_p2 = scmp.lt.s32.totalorder %s1147_s21, %s1147_s21 }
  0x24   :  { %p706_p3 = scmp.lt.s32.totalorder %s1173_s12, %s700_s11 }
  0x26   :  { %p707_p4 = por %p706_p3, %p705_p2 }
  0x28   :  { %p708_p5 = pnand %p707_p4, %p701_p1 }
  0x2a   :  { %711 = shalt.err (!%p708_p5)  }
  0x2b   :  { %41 = dma.hbm_to_vmem [thread:$0]  %s27_s3, 16, %s1147_s21, [#allocation3] }
  0x2c   :  { %s49_s15 = scalar_lea.hbm %s1486_s1, %s525_s4  ;;  %p527_p6 = scmp.lt.s32.totalorder %s1149_s25, 31 }
  0x2d   :  { %s712_s16 = scalar_lea.hbm %s49_s15, 16  ;;  %p715_p9 = scmp.lt.u32.totalorder %s49_s15, %s1486_s1 }
  0x2e   :  { %p713_p8 = scmp.ne.s32.totalorder %s49_s15, %s712_s16  ;;  %p716_p10 = scmp.lt.u32.totalorder %s1164_s8, %s712_s16 }
  0x2f   :  { %p718_p12 = scmp.lt.u32.totalorder %s712_s16, %s49_s15 }
  0x30   :  { %p717_p11 = por %p716_p10, %p715_p9 }
  0x32   :  { %p719_p13 = por %p718_p12, %p717_p11 }
  0x34   :  { %p720_p0 = pnand %p719_p13, %p713_p8 }
  0x36   :  { %723 = shalt.err (!%p720_p0)  }
  0x37   :  { %s724_s19 = scalar_lea.vmem %s1151_s24, 16  ;;  %p729_p2 = scmp.lt.s32.totalorder %s1151_s24, %s1147_s21 }
  0x38   :  { %p725_p1 = scmp.ne.s32.totalorder %s1151_s24, %s724_s19  ;;  %p730_p3 = scmp.lt.s32.totalorder %s1173_s12, %s724_s19 }
  0x3a   :  { %p731_p4 = por %p730_p3, %p729_p2 }
  0x3c   :  { %p732_p5 = pnand %p731_p4, %p725_p1 }
  0x3e   :  { %735 = shalt.err (!%p732_p5)  }
  0x3f   :  { %62 = dma.hbm_to_vmem [thread:$0]  %s49_s15, 16, %s1151_s24, [#allocation3] }
  0x40   :  { %s66_s20 = scalar_select %p65_p7, %s1149_s25, 0 }
  0x41   :  { %p86_p8 = scmp.gt.s32.totalorder %s1155_s0, 0  ;;  %p534_p9 = scmp.lt.s32.totalorder %s1155_s0, 31 }
  0x42   :  { %s1500_s20 = smov (!%p527_p6, %s66_s20), 31 }
  0x43   :  { %s87_s22 = scalar_select %p86_p8, %s1155_s0, 0 }
  0x44   :  { %s532_s23 = sshll.u32 %s1500_s20, 4 }
  0x45   :  { %s70_s29 = scalar_lea.hbm %s1486_s1, %s532_s23 }
  0x46   :  { %s736_s30 = scalar_lea.hbm %s70_s29, 16  ;;  %p739_p11 = scmp.lt.u32.totalorder %s70_s29, %s1486_s1 }
  0x47   :  { %p737_p10 = scmp.ne.s32.totalorder %s70_s29, %s736_s30  ;;  %p740_p12 = scmp.lt.u32.totalorder %s1164_s8, %s736_s30 }
  0x48   :  { %p742_p7 = scmp.lt.u32.totalorder %s736_s30, %s70_s29 }
  0x49   :  { %p741_p13 = por %p740_p12, %p739_p11 }
  0x4b   :  { %p743_p0 = por %p742_p7, %p741_p13 }
  0x4d   :  { %p744_p1 = pnand %p743_p0, %p737_p10 }
  0x4f   :  { %747 = shalt.err (!%p744_p1)  }
  0x50   :  { %s748_s24 = scalar_lea.vmem %s81_s27, 16  ;;  %p753_p2 = scmp.lt.s32.totalorder %s81_s27, %s1147_s21 }
  0x51   :  { %p749_p6 = scmp.ne.s32.totalorder %s81_s27, %s748_s24  ;;  %p754_p3 = scmp.lt.s32.totalorder %s1173_s12, %s748_s24 }
  0x53   :  { %p755_p4 = por %p754_p3, %p753_p2 }
  0x55   :  { %p756_p5 = pnand %p755_p4, %p749_p6 }
  0x57   :  { %759 = shalt.err (!%p756_p5)  }
  0x58   :  { %83 = dma.hbm_to_vmem [thread:$0]  %s70_s29, 16, %s81_s27, [#allocation3] }
  0x59   :  { %s1502_s22 = smov (!%p534_p9, %s87_s22), 31  ;;  %s1104_s25 = smov [#allocation2 + $0x3]  }
  0x5a   :  { %s101_s5 = sshll.u32 %s1104_s25, 4  ;;  %s1213_s6 = sld [smem:[#allocation5 + $0x4]]  ;;  %s102_s5 = int_to_ptr.vmem [resolvable:$true] %s101_s5 }
  0x5b   :  { %s539_s7 = sshll.u32 %s1502_s22, 4 }
  0x5c   :  { %s91_s11 = scalar_lea.hbm %s1486_s1, %s539_s7 }
  0x5d   :  { %s760_s13 = scalar_lea.hbm %s91_s11, 16  ;;  %p763_p10 = scmp.lt.u32.totalorder %s91_s11, %s1486_s1 }
  0x5e   :  { %p761_p8 = scmp.ne.s32.totalorder %s91_s11, %s760_s13  ;;  %p764_p11 = scmp.lt.u32.totalorder %s1164_s8, %s760_s13 }
  0x5f   :  { %p766_p13 = scmp.lt.u32.totalorder %s760_s13, %s91_s11 }
  0x60   :  { %p765_p12 = por %p764_p11, %p763_p10 }
  0x62   :  { %p767_p9 = por %p766_p13, %p765_p12 }
  0x64   :  { %p768_p7 = pnand %p767_p9, %p761_p8 }
  0x66   :  { %771 = shalt.err (!%p768_p7)  }
  0x67   :  { %s772_s27 = scalar_lea.vmem %s102_s5, 16  ;;  %p777_p1 = scmp.lt.s32.totalorder %s102_s5, %s1147_s21 }
  0x68   :  { %p773_p0 = scmp.ne.s32.totalorder %s102_s5, %s772_s27  ;;  %p778_p6 = scmp.lt.s32.totalorder %s1173_s12, %s772_s27 }
  0x6a   :  { %p779_p2 = por %p778_p6, %p777_p1 }
  0x6c   :  { %p780_p3 = pnand %p779_p2, %p773_p0 }
  0x6e   :  { %783 = shalt.err (!%p780_p3)  }
  0x6f   :  { %104 = dma.hbm_to_vmem [thread:$0]  %s91_s11, 16, %s102_s5, [#allocation3] }
  0x70   :  { %s1105_s0 = smov [#allocation2 + $0x4]   ;;  %s1224_s17 = sld [smem:[#allocation5 + $0x5]] }
  0x71   :  { %s122_s16 = sshll.u32 %s1105_s0, 4  ;;  %p107_p4 = scmp.gt.s32.totalorder %s1213_s6, 0  ;;  %s1226_s16 = int_to_ptr.vmem [resolvable:$true] %s122_s16 }
  0x72   :  { %p541_p5 = scmp.lt.s32.totalorder %s1213_s6, 31  ;;  %s1106_s18 = smov [#allocation2 + $0x5]  }
  0x73   :  { %s143_s19 = sshll.u32 %s1106_s18, 4  ;;  %s1230_s20 = sld [smem:[#allocation5 + $0x6]]  ;;  %s1233_s19 = int_to_ptr.vmem [resolvable:$true] %s143_s19 }
  0x74   :  { %s1504_s6 = smov (!%p107_p4, %s1213_s6), 0  ;;  %s1107_s23 = smov [#allocation2 + $0x6]  }
  0x75   :  { %s1506_s6 = smov (!%p541_p5, %s1504_s6), 31  ;;  %s164_s26 = sshll.u32 %s1107_s23, 4  ;;  %s1260_s26 = int_to_ptr.vmem [resolvable:$true] %s164_s26 }
  0x76   :  { %p128_p8 = scmp.gt.s32.totalorder %s1224_s17, 0  ;;  %s546_s22 = sshll.u32 %s1506_s6, 4 }
  0x77   :  { %s112_s30 = scalar_lea.hbm %s1486_s1, %s546_s22 }
  0x78   :  { %s784_s3 = scalar_lea.hbm %s112_s30, 16  ;;  %p787_p13 = scmp.lt.u32.totalorder %s112_s30, %s1486_s1 }
  0x79   :  { %p149_p11 = scmp.gt.s32.totalorder %s1230_s20, 0  ;;  %p785_p12 = scmp.ne.s32.totalorder %s112_s30, %s784_s3 }
  0x7a   :  { %p788_p9 = scmp.lt.u32.totalorder %s1164_s8, %s784_s3  ;;  %p790_p0 = scmp.lt.u32.totalorder %s784_s3, %s112_s30 }
  0x7c   :  { %p789_p7 = por %p788_p9, %p787_p13 }
  0x7e   :  { %p791_p1 = por %p790_p0, %p789_p7 }
  0x80   :  { %p792_p6 = pnand %p791_p1, %p785_p12 }
  0x82   :  { %795 = shalt.err (!%p792_p6)  }
  0x83   :  { %s796_s25 = scalar_lea.vmem %s1226_s16, 16  ;;  %p801_p3 = scmp.lt.s32.totalorder %s1226_s16, %s1147_s21 }
  0x84   :  { %p797_p2 = scmp.ne.s32.totalorder %s1226_s16, %s796_s25  ;;  %p802_p4 = scmp.lt.s32.totalorder %s1173_s12, %s796_s25 }
  0x86   :  { %p803_p5 = por %p802_p4, %p801_p3 }
  0x88   :  { %p804_p10 = pnand %p803_p5, %p797_p2 }
  0x8a   :  { %807 = shalt.err (!%p804_p10)  }
  0x8b   :  { %125 = dma.hbm_to_vmem [thread:$0]  %s112_s30, 16, %s1226_s16, [#allocation3] }
  0x8c   :  { %s129_s5 = scalar_select %p128_p8, %s1224_s17, 0 }
  0x8d   :  { %s150_s6 = scalar_select %p149_p11, %s1230_s20, 0 }
  0x8e   :  { %p1488_p12 = scmp.lt.s32.totalorder %s1224_s17, 31  ;;  %p555_p13 = scmp.lt.s32.totalorder %s1230_s20, 31 }
  0x8f   :  { %s1262_s9 = sld [smem:[#allocation5 + $0x7]] }
  0x90   :  { %s1508_s5 = smov (!%p1488_p12, %s129_s5), 31 }
  0x91   :  { %s553_s7 = sshll.u32 %s1508_s5, 4 }
  0x92   :  { %s133_s13 = scalar_lea.hbm %s1486_s1, %s553_s7 }
  0x93   :  { %s808_s14 = scalar_lea.hbm %s133_s13, 16  ;;  %p811_p8 = scmp.lt.u32.totalorder %s133_s13, %s1486_s1 }
  0x94   :  { %p809_p10 = scmp.ne.s32.totalorder %s133_s13, %s808_s14  ;;  %p812_p9 = scmp.lt.u32.totalorder %s1164_s8, %s808_s14 }
  0x95   :  { %p814_p7 = scmp.lt.u32.totalorder %s808_s14, %s133_s13 }
  0x96   :  { %p813_p11 = por %p812_p9, %p811_p8 }
  0x98   :  { %p815_p0 = por %p814_p7, %p813_p11 }
  0x9a   :  { %p816_p1 = pnand %p815_p0, %p809_p10 }
  0x9c   :  { %819 = shalt.err (!%p816_p1)  }
  0x9d   :  { %s820_s0 = scalar_lea.vmem %s1233_s19, 16  ;;  %p825_p2 = scmp.lt.s32.totalorder %s1233_s19, %s1147_s21 }
  0x9e   :  { %p821_p6 = scmp.ne.s32.totalorder %s1233_s19, %s820_s0  ;;  %p826_p3 = scmp.lt.s32.totalorder %s1173_s12, %s820_s0 }
  0xa0   :  { %p827_p4 = por %p826_p3, %p825_p2 }
  0xa2   :  { %p828_p5 = pnand %p827_p4, %p821_p6 }
  0xa4   :  { %831 = shalt.err (!%p828_p5)  }
  0xa5   :  { %146 = dma.hbm_to_vmem [thread:$0]  %s133_s13, 16, %s1233_s19, [#allocation3] }
  0xa6   :  { %s1510_s6 = smov (!%p555_p13, %s150_s6), 31  ;;  %s1108_s16 = smov [#allocation2 + $0x7]  }
  0xa7   :  { %s185_s17 = sshll.u32 %s1108_s16, 4  ;;  %s1279_s18 = sld [smem:[#allocation5 + $0x8]]  ;;  %s1281_s17 = int_to_ptr.vmem [resolvable:$true] %s185_s17 }
  0xa8   :  { %s560_s22 = sshll.u32 %s1510_s6, 4  ;;  %p170_p12 = scmp.gt.s32.totalorder %s1262_s9, 0 }
  0xa9   :  { %s154_s29 = scalar_lea.hbm %s1486_s1, %s560_s22 }
  0xaa   :  { %s832_s30 = scalar_lea.hbm %s154_s29, 16  ;;  %p835_p8 = scmp.lt.u32.totalorder %s154_s29, %s1486_s1 }
  0xab   :  { %p833_p10 = scmp.ne.s32.totalorder %s154_s29, %s832_s30  ;;  %p836_p9 = scmp.lt.u32.totalorder %s1164_s8, %s832_s30 }
  0xac   :  { %p838_p11 = scmp.lt.u32.totalorder %s832_s30, %s154_s29 }
  0xad   :  { %p837_p13 = por %p836_p9, %p835_p8 }
  0xaf   :  { %p839_p7 = por %p838_p11, %p837_p13 }
  0xb1   :  { %p840_p0 = pnand %p839_p7, %p833_p10 }
  0xb3   :  { %843 = shalt.err (!%p840_p0)  }
  0xb4   :  { %s844_s19 = scalar_lea.vmem %s1260_s26, 16  ;;  %p849_p6 = scmp.lt.s32.totalorder %s1260_s26, %s1147_s21 }
  0xb5   :  { %p845_p1 = scmp.ne.s32.totalorder %s1260_s26, %s844_s19  ;;  %p850_p2 = scmp.lt.s32.totalorder %s1173_s12, %s844_s19 }
  0xb7   :  { %p851_p3 = por %p850_p2, %p849_p6 }
  0xb9   :  { %p852_p4 = pnand %p851_p3, %p845_p1 }
  0xbb   :  { %855 = shalt.err (!%p852_p4)  }
  0xbc   :  { %167 = dma.hbm_to_vmem [thread:$0]  %s154_s29, 16, %s1260_s26, [#allocation3] }
  0xbd   :  { %s171_s20 = scalar_select %p170_p12, %s1262_s9, 0 }
  0xbe   :  { %p562_p5 = scmp.lt.s32.totalorder %s1262_s9, 31  ;;  %p191_p10 = scmp.gt.s32.totalorder %s1279_s18, 0 }
  0xbf   :  { %p569_p8 = scmp.lt.s32.totalorder %s1279_s18, 31  ;;  %s1109_s5 = smov [#allocation2 + $0x8]  }
  0xc0   :  { %s1512_s20 = smov (!%p562_p5, %s171_s20), 31  ;;  %s206_s6 = sshll.u32 %s1109_s5, 4  ;;  %s1307_s6 = int_to_ptr.vmem [resolvable:$true] %s206_s6 }
  0xc1   :  { %s192_s24 = scalar_select %p191_p10, %s1279_s18, 0 }
  0xc2   :  { %s567_s25 = sshll.u32 %s1512_s20, 4 }
  0xc3   :  { %s175_s11 = scalar_lea.hbm %s1486_s1, %s567_s25 }
  0xc4   :  { %s856_s13 = scalar_lea.hbm %s175_s11, 16  ;;  %p859_p12 = scmp.lt.u32.totalorder %s175_s11, %s1486_s1 }
  0xc5   :  { %p857_p9 = scmp.ne.s32.totalorder %s175_s11, %s856_s13  ;;  %p860_p13 = scmp.lt.u32.totalorder %s1164_s8, %s856_s13 }
  0xc6   :  { %p862_p7 = scmp.lt.u32.totalorder %s856_s13, %s175_s11 }
  0xc7   :  { %p861_p11 = por %p860_p13, %p859_p12 }
  0xc9   :  { %p863_p0 = por %p862_p7, %p861_p11 }
  0xcb   :  { %p864_p1 = pnand %p863_p0, %p857_p9 }
  0xcd   :  { %867 = shalt.err (!%p864_p1)  }
  0xce   :  { %s868_s9 = scalar_lea.vmem %s1281_s17, 16  ;;  %p873_p2 = scmp.lt.s32.totalorder %s1281_s17, %s1147_s21 }
  0xcf   :  { %p869_p6 = scmp.ne.s32.totalorder %s1281_s17, %s868_s9  ;;  %p874_p3 = scmp.lt.s32.totalorder %s1173_s12, %s868_s9 }
  0xd1   :  { %p875_p4 = por %p874_p3, %p873_p2 }
  0xd3   :  { %p876_p5 = pnand %p875_p4, %p869_p6 }
  0xd5   :  { %879 = shalt.err (!%p876_p5)  }
  0xd6   :  { %188 = dma.hbm_to_vmem [thread:$0]  %s175_s11, 16, %s1281_s17, [#allocation3] }
  0xd7   :  { %s1514_s24 = smov (!%p569_p8, %s192_s24), 31  ;;  %s1321_s15 = sld [smem:[#allocation5 + $0x9]] }
  0xd8   :  { %s574_s27 = sshll.u32 %s1514_s24, 4  ;;  %s1110_s0 = smov [#allocation2 + $0x9]  }
  0xd9   :  { %s227_s16 = sshll.u32 %s1110_s0, 4  ;;  %s196_s28 = scalar_lea.hbm %s1486_s1, %s574_s27  ;;  %s1326_s16 = int_to_ptr.vmem [resolvable:$true] %s227_s16 }
  0xda   :  { %s880_s29 = scalar_lea.hbm %s196_s28, 16  ;;  %p883_p9 = scmp.lt.u32.totalorder %s196_s28, %s1486_s1 }
  0xdb   :  { %p881_p10 = scmp.ne.s32.totalorder %s196_s28, %s880_s29  ;;  %p884_p12 = scmp.lt.u32.totalorder %s1164_s8, %s880_s29 }
  0xdc   :  { %p886_p8 = scmp.lt.u32.totalorder %s880_s29, %s196_s28 }
  0xdd   :  { %p885_p13 = por %p884_p12, %p883_p9 }
  0xdf   :  { %p887_p11 = por %p886_p8, %p885_p13 }
  0xe1   :  { %p888_p7 = pnand %p887_p11, %p881_p10 }
  0xe3   :  { %891 = shalt.err (!%p888_p7)  }
  0xe4   :  { %s892_s17 = scalar_lea.vmem %s1307_s6, 16  ;;  %p897_p1 = scmp.lt.s32.totalorder %s1307_s6, %s1147_s21 }
  0xe5   :  { %p893_p0 = scmp.ne.s32.totalorder %s1307_s6, %s892_s17  ;;  %p898_p6 = scmp.lt.s32.totalorder %s1173_s12, %s892_s17 }
  0xe7   :  { %p899_p2 = por %p898_p6, %p897_p1 }
  0xe9   :  { %p900_p3 = pnand %p899_p2, %p893_p0 }
  0xeb   :  { %903 = shalt.err (!%p900_p3)  }
  0xec   :  { %209 = dma.hbm_to_vmem [thread:$0]  %s196_s28, 16, %s1307_s6, [#allocation3] }
  0xed   :  { %s1338_s18 = sld [smem:[#allocation5 + $0xa]]  ;;  %s1111_s4 = smov [#allocation2 + $0xa]  }
  0xee   :  { %s248_s19 = sshll.u32 %s1111_s4, 4  ;;  %s1340_s20 = sld [smem:[#allocation5 + $0xb]]  ;;  %s1344_s19 = int_to_ptr.vmem [resolvable:$true] %s248_s19 }
  0xef   :  { %p212_p4 = scmp.gt.s32.totalorder %s1321_s15, 0  ;;  %p576_p5 = scmp.lt.s32.totalorder %s1321_s15, 31 }
  0xf0   :  { %s1112_s24 = smov [#allocation2 + $0xb]   ;;  %s1349_s5 = sld [smem:[#allocation5 + $0xc]] }
  0xf1   :  { %s1516_s15 = smov (!%p212_p4, %s1321_s15), 0  ;;  %s1347_s25 = sshll.u32 %s1112_s24, 4  ;;  %s1379_s25 = int_to_ptr.vmem [resolvable:$true] %s1347_s25 }
  0xf2   :  { %s1518_s15 = smov (!%p576_p5, %s1516_s15), 31 }
  0xf3   :  { %p233_p10 = scmp.gt.s32.totalorder %s1338_s18, 0  ;;  %s581_s6 = sshll.u32 %s1518_s15, 4 }
  0xf4   :  { %p254_p12 = scmp.gt.s32.totalorder %s1340_s20, 0  ;;  %s217_s11 = scalar_lea.hbm %s1486_s1, %s581_s6 }
  0xf5   :  { %s904_s13 = scalar_lea.hbm %s217_s11, 16  ;;  %p907_p11 = scmp.lt.u32.totalorder %s217_s11, %s1486_s1 }
  0xf6   :  { %p905_p8 = scmp.ne.s32.totalorder %s217_s11, %s904_s13  ;;  %p908_p7 = scmp.lt.u32.totalorder %s1164_s8, %s904_s13 }
  0xf7   :  { %p910_p1 = scmp.lt.u32.totalorder %s904_s13, %s217_s11 }
  0xf8   :  { %p909_p0 = por %p908_p7, %p907_p11 }
  0xfa   :  { %p911_p6 = por %p910_p1, %p909_p0 }
  0xfc   :  { %p912_p2 = pnand %p911_p6, %p905_p8 }
  0xfe   :  { %915 = shalt.err (!%p912_p2)  }
  0xff   :  { %s916_s9 = scalar_lea.vmem %s1326_s16, 16  ;;  %p921_p4 = scmp.lt.s32.totalorder %s1326_s16, %s1147_s21 }
 0x100   :  { %p917_p3 = scmp.ne.s32.totalorder %s1326_s16, %s916_s9  ;;  %p922_p5 = scmp.lt.s32.totalorder %s1173_s12, %s916_s9 }
 0x102   :  { %p923_p13 = por %p922_p5, %p921_p4 }
 0x104   :  { %p924_p9 = pnand %p923_p13, %p917_p3 }
 0x106   :  { %927 = shalt.err (!%p924_p9)  }
 0x107   :  { %230 = dma.hbm_to_vmem [thread:$0]  %s217_s11, 16, %s1326_s16, [#allocation3] }
 0x108   :  { %s234_s15 = scalar_select %p233_p10, %s1338_s18, 0 }
 0x109   :  { %s255_s27 = scalar_select %p254_p12, %s1340_s20, 0 }
 0x10a   :  { %p1489_p8 = scmp.lt.s32.totalorder %s1338_s18, 31  ;;  %p1490_p11 = scmp.lt.s32.totalorder %s1340_s20, 31 }
 0x10c   :  { %s1520_s15 = smov (!%p1489_p8, %s234_s15), 31  ;;  %s1522_s27 = smov (!%p1490_p11, %s255_s27), 31 }
 0x10d   :  { %s588_s0 = sshll.u32 %s1520_s15, 4  ;;  %s595_s29 = sshll.u32 %s1522_s27, 4 }
 0x10e   :  { %s238_s28 = scalar_lea.hbm %s1486_s1, %s588_s0 }
 0x10f   :  { %s928_s30 = scalar_lea.hbm %s238_s28, 16  ;;  %p931_p10 = scmp.lt.u32.totalorder %s238_s28, %s1486_s1 }
 0x110   :  { %p929_p9 = scmp.ne.s32.totalorder %s238_s28, %s928_s30  ;;  %p932_p13 = scmp.lt.u32.totalorder %s1164_s8, %s928_s30 }
 0x111   :  { %p934_p7 = scmp.lt.u32.totalorder %s928_s30, %s238_s28 }
 0x112   :  { %p933_p12 = por %p932_p13, %p931_p10 }
 0x114   :  { %p935_p0 = por %p934_p7, %p933_p12 }
 0x116   :  { %p936_p1 = pnand %p935_p0, %p929_p9 }
 0x118   :  { %939 = shalt.err (!%p936_p1)  }
 0x119   :  { %s940_s17 = scalar_lea.vmem %s1344_s19, 16  ;;  %p945_p2 = scmp.lt.s32.totalorder %s1344_s19, %s1147_s21 }
 0x11a   :  { %p941_p6 = scmp.ne.s32.totalorder %s1344_s19, %s940_s17  ;;  %p946_p3 = scmp.lt.s32.totalorder %s1173_s12, %s940_s17 }
 0x11c   :  { %p947_p4 = por %p946_p3, %p945_p2 }
 0x11e   :  { %p948_p5 = pnand %p947_p4, %p941_p6 }
 0x120   :  { %951 = shalt.err (!%p948_p5)  }
 0x121   :  { %251 = dma.hbm_to_vmem [thread:$0]  %s238_s28, 16, %s1344_s19, [#allocation3] }
 0x122   :  { %s259_s20 = scalar_lea.hbm %s1486_s1, %s595_s29  ;;  %p275_p8 = scmp.gt.s32.totalorder %s1349_s5, 0 }
 0x123   :  { %s952_s24 = scalar_lea.hbm %s259_s20, 16  ;;  %p955_p9 = scmp.lt.u32.totalorder %s259_s20, %s1486_s1 }
 0x124   :  { %p953_p11 = scmp.ne.s32.totalorder %s259_s20, %s952_s24  ;;  %p956_p10 = scmp.lt.u32.totalorder %s1164_s8, %s952_s24 }
 0x125   :  { %p958_p12 = scmp.lt.u32.totalorder %s952_s24, %s259_s20 }
 0x126   :  { %p957_p13 = por %p956_p10, %p955_p9 }
 0x128   :  { %p959_p7 = por %p958_p12, %p957_p13 }
 0x12a   :  { %p960_p0 = pnand %p959_p7, %p953_p11 }
 0x12c   :  { %963 = shalt.err (!%p960_p0)  }
 0x12d   :  { %s964_s19 = scalar_lea.vmem %s1379_s25, 16  ;;  %p969_p6 = scmp.lt.s32.totalorder %s1379_s25, %s1147_s21 }
 0x12e   :  { %p965_p1 = scmp.ne.s32.totalorder %s1379_s25, %s964_s19  ;;  %p970_p2 = scmp.lt.s32.totalorder %s1173_s12, %s964_s19 }
 0x130   :  { %p971_p3 = por %p970_p2, %p969_p6 }
 0x132   :  { %p972_p4 = pnand %p971_p3, %p965_p1 }
 0x134   :  { %975 = shalt.err (!%p972_p4)  }
 0x135   :  { %272 = dma.hbm_to_vmem [thread:$0]  %s259_s20, 16, %s1379_s25, [#allocation3] }
 0x136   :  { %s276_s10 = scalar_select %p275_p8, %s1349_s5, 0 }
 0x137   :  { %p597_p5 = scmp.lt.s32.totalorder %s1349_s5, 31  ;;  %s1113_s11 = smov [#allocation2 + $0xc]  }
 0x138   :  { %s290_s13 = sshll.u32 %s1113_s11, 4  ;;  %s1412_s14 = sld [smem:[#allocation5 + $0xd]]  ;;  %s291_s13 = int_to_ptr.vmem [resolvable:$true] %s290_s13 }
 0x139   :  { %s1524_s10 = smov (!%p597_p5, %s276_s10), 31  ;;  %s1114_s0 = smov [#allocation2 + $0xd]  }
 0x13a   :  { %s602_s26 = sshll.u32 %s1524_s10, 4  ;;  %s311_s22 = sshll.u32 %s1114_s0, 4  ;;  %s312_s22 = int_to_ptr.vmem [resolvable:$true] %s311_s22 }
 0x13b   :  { %s280_s27 = scalar_lea.hbm %s1486_s1, %s602_s26 }
 0x13c   :  { %s976_s23 = scalar_lea.hbm %s280_s27, 16  ;;  %p979_p8 = scmp.lt.u32.totalorder %s280_s27, %s1486_s1 }
 0x13d   :  { %p977_p11 = scmp.ne.s32.totalorder %s280_s27, %s976_s23  ;;  %p980_p9 = scmp.lt.u32.totalorder %s1164_s8, %s976_s23 }
 0x13e   :  { %p982_p13 = scmp.lt.u32.totalorder %s976_s23, %s280_s27 }
 0x13f   :  { %p981_p10 = por %p980_p9, %p979_p8 }
 0x141   :  { %p983_p12 = por %p982_p13, %p981_p10 }
 0x143   :  { %p984_p7 = pnand %p983_p12, %p977_p11 }
 0x145   :  { %987 = shalt.err (!%p984_p7)  }
 0x146   :  { %s988_s5 = scalar_lea.vmem %s291_s13, 16  ;;  %p993_p1 = scmp.lt.s32.totalorder %s291_s13, %s1147_s21 }
 0x147   :  { %p989_p0 = scmp.ne.s32.totalorder %s291_s13, %s988_s5  ;;  %p994_p6 = scmp.lt.s32.totalorder %s1173_s12, %s988_s5 }
 0x149   :  { %p995_p2 = por %p994_p6, %p993_p1 }
 0x14b   :  { %p996_p3 = pnand %p995_p2, %p989_p0 }
 0x14d   :  { %999 = shalt.err (!%p996_p3)  }
 0x14e   :  { %293 = dma.hbm_to_vmem [thread:$0]  %s280_s27, 16, %s291_s13, [#allocation3] }
 0x14f   :  { %p296_p4 = scmp.gt.s32.totalorder %s1412_s14, 0  ;;  %p604_p5 = scmp.lt.s32.totalorder %s1412_s14, 31 }
 0x150   :  { %s1425_s29 = sld [smem:[#allocation5 + $0xe]]  ;;  %s1115_s30 = smov [#allocation2 + $0xe]  }
 0x151   :  { %s1526_s14 = smov (!%p296_p4, %s1412_s14), 0  ;;  %s332_s3 = sshll.u32 %s1115_s30, 4  ;;  %s1430_s3 = int_to_ptr.vmem [resolvable:$true] %s332_s3 }
 0x152   :  { %s1428_s16 = sld [smem:[#allocation5 + $0xf]]  ;;  %s1528_s14 = smov (!%p604_p5, %s1526_s14), 31 }
 0x153   :  { %s609_s17 = sshll.u32 %s1528_s14, 4 }
 0x154   :  { %s301_s20 = scalar_lea.hbm %s1486_s1, %s609_s17 }
 0x155   :  { %s1000_s24 = scalar_lea.hbm %s301_s20, 16  ;;  %p1003_p9 = scmp.lt.u32.totalorder %s301_s20, %s1486_s1 }
 0x156   :  { %p317_p11 = scmp.gt.s32.totalorder %s1425_s29, 0  ;;  %p1001_p8 = scmp.ne.s32.totalorder %s301_s20, %s1000_s24 }
 0x157   :  { %p1004_p10 = scmp.lt.u32.totalorder %s1164_s8, %s1000_s24  ;;  %p1006_p12 = scmp.lt.u32.totalorder %s1000_s24, %s301_s20 }
 0x159   :  { %p1005_p13 = por %p1004_p10, %p1003_p9 }
 0x15b   :  { %p1007_p7 = por %p1006_p12, %p1005_p13 }
 0x15d   :  { %p1008_p0 = pnand %p1007_p7, %p1001_p8 }
 0x15f   :  { %1011 = shalt.err (!%p1008_p0)  }
 0x160   :  { %s1012_s19 = scalar_lea.vmem %s312_s22, 16  ;;  %p1017_p6 = scmp.lt.s32.totalorder %s312_s22, %s1147_s21 }
 0x161   :  { %p1013_p1 = scmp.ne.s32.totalorder %s312_s22, %s1012_s19  ;;  %p1018_p2 = scmp.lt.s32.totalorder %s1173_s12, %s1012_s19 }
 0x163   :  { %p1019_p3 = por %p1018_p2, %p1017_p6 }
 0x165   :  { %p1020_p4 = pnand %p1019_p3, %p1013_p1 }
 0x167   :  { %1023 = shalt.err (!%p1020_p4)  }
 0x168   :  { %314 = dma.hbm_to_vmem [thread:$0]  %s301_s20, 16, %s312_s22, [#allocation3] }
 0x169   :  { %s318_s10 = scalar_select %p317_p11, %s1425_s29, 0 }
 0x16a   :  { %p611_p5 = scmp.lt.s32.totalorder %s1425_s29, 31  ;;  %p338_p8 = scmp.gt.s32.totalorder %s1428_s16, 0 }
 0x16b   :  { %p618_p9 = scmp.lt.s32.totalorder %s1428_s16, 31  ;;  %s1116_s15 = smov [#allocation2 + $0xf]  }
 0x16c   :  { %s1530_s10 = smov (!%p611_p5, %s318_s10), 31  ;;  %s353_s27 = sshll.u32 %s1116_s15, 4  ;;  %s354_s27 = int_to_ptr.vmem [resolvable:$true] %s353_s27 }
 0x16d   :  { %s339_s11 = scalar_select %p338_p8, %s1428_s16, 0 }
 0x16e   :  { %s616_s13 = sshll.u32 %s1530_s10, 4 }
 0x16f   :  { %s322_s9 = scalar_lea.hbm %s1486_s1, %s616_s13 }
 0x170   :  { %s1024_s0 = scalar_lea.hbm %s322_s9, 16  ;;  %p1027_p13 = scmp.lt.u32.totalorder %s322_s9, %s1486_s1 }
 0x171   :  { %p1025_p10 = scmp.ne.s32.totalorder %s322_s9, %s1024_s0  ;;  %p1028_p12 = scmp.lt.u32.totalorder %s1164_s8, %s1024_s0 }
 0x172   :  { %p1030_p7 = scmp.lt.u32.totalorder %s1024_s0, %s322_s9 }
 0x173   :  { %p1029_p11 = por %p1028_p12, %p1027_p13 }
 0x175   :  { %p1031_p0 = por %p1030_p7, %p1029_p11 }
 0x177   :  { %p1032_p1 = pnand %p1031_p0, %p1025_p10 }
 0x179   :  { %1035 = shalt.err (!%p1032_p1)  }
 0x17a   :  { %s1036_s28 = scalar_lea.vmem %s1430_s3, 16  ;;  %p1041_p2 = scmp.lt.s32.totalorder %s1430_s3, %s1147_s21 }
 0x17b   :  { %p1037_p6 = scmp.ne.s32.totalorder %s1430_s3, %s1036_s28  ;;  %p1042_p3 = scmp.lt.s32.totalorder %s1173_s12, %s1036_s28 }
 0x17d   :  { %p1043_p4 = por %p1042_p3, %p1041_p2 }
 0x17f   :  { %p1044_p5 = pnand %p1043_p4, %p1037_p6 }
 0x181   :  { %1047 = shalt.err (!%p1044_p5)  }
 0x182   :  { %335 = dma.hbm_to_vmem [thread:$0]  %s322_s9, 16, %s1430_s3, [#allocation3] }
 0x183   :  { %s1532_s11 = smov (!%p618_p9, %s339_s11), 31 }
 0x184   :  { %s623_s25 = sshll.u32 %s1532_s11, 4 }
 0x185   :  { %s343_s30 = scalar_lea.hbm %s1486_s1, %s623_s25 }
 0x186   :  { %s1048_s17 = scalar_lea.hbm %s343_s30, 16  ;;  %p1051_p10 = scmp.lt.u32.totalorder %s343_s30, %s1486_s1 }
 0x187   :  { %p1049_p8 = scmp.ne.s32.totalorder %s343_s30, %s1048_s17  ;;  %p1052_p13 = scmp.lt.u32.totalorder %s1164_s8, %s1048_s17 }
 0x188   :  { %p1054_p11 = scmp.lt.u32.totalorder %s1048_s17, %s343_s30 }
 0x189   :  { %p1053_p12 = por %p1052_p13, %p1051_p10 }
 0x18b   :  { %p1055_p7 = por %p1054_p11, %p1053_p12 }
 0x18d   :  { %p1056_p0 = pnand %p1055_p7, %p1049_p8 }
 0x18f   :  { %1059 = shalt.err (!%p1056_p0)  }
 0x190   :  { %s1060_s3 = scalar_lea.vmem %s354_s27, 16  ;;  %p1065_p1 = scmp.lt.s32.totalorder %s354_s27, %s1147_s21 }
 0x191   :  { %p1061_p9 = scmp.ne.s32.totalorder %s354_s27, %s1060_s3  ;;  %p1066_p6 = scmp.lt.s32.totalorder %s1173_s12, %s1060_s3 }
 0x193   :  { %p1067_p2 = por %p1066_p6, %p1065_p1 }
 0x195   :  { %p1068_p3 = pnand %p1067_p2, %p1061_p9 }
 0x197   :  { %1071 = shalt.err (!%p1068_p3)  }
 0x198   :  { %356 = dma.hbm_to_vmem [thread:$0]  %s343_s30, 16, %s354_s27, [#allocation3] }
 0x199   :  { %1096 = dma.done.wait [#allocation3], 256 }
 0x19a   :  { %1097 = vsyncadd [#allocation3], 4294967040  ;;  %s1117_s16 = smov [#allocation6]   ;;  %v393_v0 = vld [vmem:[#allocation2] sm:$0xff]  ;;  %v394_v1 = vld [vmem:[#allocation2 + $0x8] sm:$0xff] }
 0x19b   :  { %s406_s1 = sshll.u32 %s1117_s16, 4  ;;  %395 = vst [vmem:[#allocation6] sm:$0xff] %v393_v0  ;;  %396 = vst [vmem:[#allocation6 + $0x8] sm:$0xff] %v394_v1  ;;  %s407_s1 = int_to_ptr.vmem [resolvable:$true] %s406_s1 }
 0x19c   :  { %s1072_s8 = scalar_lea.vmem %s407_s1, 256  ;;  %p1077_p5 = scmp.lt.s32.totalorder %s407_s1, %s407_s1 }
 0x19d   :  { %p1073_p4 = scmp.ne.s32.totalorder %s407_s1, %s1072_s8  ;;  %p1078_p8 = scmp.lt.s32.totalorder %s1072_s8, %s1072_s8 }
 0x19f   :  { %p1079_p10 = por %p1078_p8, %p1077_p5 }
 0x1a1   :  { %p1080_p13 = pnand %p1079_p10, %p1073_p4 }
 0x1a3   :  { %1083 = shalt.err (!%p1080_p13)
}
 0x1a4   :  { %s1084_s20 = scalar_lea.hbm %s1487_s2, 256 }
 0x1a5   :  { %p1085_p12 = scmp.ne.s32.totalorder %s1487_s2, %s1084_s20  ;;  %p1088_p11 = scmp.lt.u32.totalorder %s1084_s20, %s1487_s2 }
 0x1a7   :  { %p1090_p7 = pnand %p1088_p11, %p1085_p12 }
 0x1a9   :  { %1093 = shalt.err (!%p1090_p7)
}
 0x1aa   :  { %s1118_s10 = smov 128   ;;  %s1119_s11 = smov 8  }
 0x1ab   :  { %412 = dma.vmem_to_hbm [thread:$0]  %s407_s1, 256, %s1487_s2, [#allocation7], %s1118_s10, %s1118_s10, %s1119_s11  }
 0x1ac   :  { %1098 = dma.done.wait [#allocation7], 256  }
 0x1ad   :  { %1099 = vsyncadd [#allocation7], 4294967040 }
 0x1ae   :  { %416 = vsyncpa [#allocation7], 1 }
 0x1af   :  { %417 = vsyncmov [#allocation3] }
 0x1b2   :  { %s418_s26 = vpop.sfrf %417 }
 0x1b3   :  { %p624_p0 = scmp.ne.s32.totalorder %s418_s26, 0 }
 0x1b5   :  { %422 = shalt.err (%p624_p0)  }
 0x1b6   :  { %424 = vsyncmov [#allocation3 + $0x1] }
 0x1b9   :  { %s425_s9 = vpop.sfrf %424 }
 0x1ba   :  { %p625_p9 = scmp.ne.s32.totalorder %s425_s9, 0 }
 0x1bc   :  { %429 = shalt.err (%p625_p9)  }

</bundles_post_ra>
